<compile_context>
chip_gen: v7x
topology: tpu7x:2x2x1
jax: 0.10.0
libtpu: 0.0.40
codegen_flags: <defaults>
</compile_context>

<pallas_src>
import functools

import jax
import jax.numpy as jnp
import numpy as np
from jax.experimental import pallas as pl
from jax.experimental.pallas import tpu as pltpu


def _upconv_kernel(x_ref, w_ref, b_ref, o_ref, *, K, Wp, L):
    """One batch element.

    x_ref : (1, Cin_p, Lp)     flattened reflect-padded upsampled image (bf16),
                               Lp = (Hu + 2*pad + 1) * Wp
    w_ref : (K*K, Cout, Cin_p) per-tap weight matrices (bf16)
    b_ref : (Cout, 1)          bias (f32)
    o_ref : (1, Cout, L)       flattened full-width conv output, L = Hu * Wp
    """
    cout = o_ref.shape[1]
    acc = jnp.zeros((cout, L), jnp.float32)
    # K is small & static -> fully unrolled; each tap is one wide MXU matmul
    # whose RHS is a contiguous, lane-dense slice of the flattened image.
    for kh in range(K):
        for kw in range(K):
            off = kh * Wp + kw
            slab = x_ref[0, :, off:off + L]            # (Cin_p, L) lane slice
            tap = w_ref[kh * K + kw]                   # (Cout, Cin_p)
            acc = acc + jnp.dot(tap, slab, preferred_element_type=jnp.float32)
    acc = acc + b_ref[...]                             # (Cout, 1) broadcast over lanes
    o_ref[0] = acc.astype(o_ref.dtype)


def upsample_conv_layer(x_nchw, weight_oihw, bias, *, kernel_size,
                        upsampling_factor, compute_dtype=jnp.bfloat16):
    """Forward pass of UpsampleConvLayer.

    x_nchw      : (N, Cin, H, W)       float32
    weight_oihw : (Cout, Cin, K, K)    float32 (PyTorch Conv2d layout)
    bias        : (Cout,)              float32
    returns     : (N, Cout, H*s, W*s)  float32
    Note: pad = K//2 symmetric reflect matches PyTorch only for odd K.
    """
    N, Cin, H, W = x_nchw.shape
    Cout = weight_oihw.shape[0]
    K = kernel_size
    pad = K // 2
    s = upsampling_factor

    # ---- nearest-neighbor upsample + reflect pad (plain JAX, stays NCHW) ----
    # TODO(synk): fuse the nearest upsample + reflect pad into the kernel (in-VMEM
    # row/col gather) to remove this HBM materialization at production sizes.
    x = x_nchw
    if s > 1:
        x = jnp.repeat(x, s, axis=2)
        x = jnp.repeat(x, s, axis=3)
    Hu, Wu = H * s, W * s

    # Padded row width; bump it slightly so Hu*Wp (the lane dim of every block)
    # is a multiple of 128 -> unmasked full-lane vector stores.
    Wp = Wu + 2 * pad
    for extra in range(33):
        if (Hu * (Wp + extra)) % 128 == 0:
            Wp = Wp + extra
            break
    L = Hu * Wp                   # flattened full-width conv output length
    Hp = Hu + 2 * pad + 1         # +1 garbage row keeps the last tap's slice in range
    Lp = Hp * Wp

    x = jnp.pad(x, ((0, 0), (0, 0), (pad, pad), (pad, pad)), mode="reflect")
    # Extra (never-read-for-valid-columns) row/cols, zero filled.
    x = jnp.pad(x, ((0, 0), (0, 0), (0, 1), (0, Wp - (Wu + 2 * pad))))

    # Pad channels (sublane dim) to a multiple of 8; zero rows meet zero weights.
    Cin_p = ((Cin + 7) // 8) * 8
    if Cin_p != Cin:
        x = jnp.pad(x, ((0, 0), (0, Cin_p - Cin), (0, 0), (0, 0)))

    # Row-major flatten (free) -> lane-dense last dim; bf16 for HBM/VMEM/MXU.
    x_flat = x.reshape(N, Cin_p, Lp).astype(compute_dtype)

    # Weights as K*K per-tap (Cout, Cin_p) matrices matching the kernel's order.
    w = jnp.transpose(weight_oihw, (2, 3, 0, 1)).reshape(K * K, Cout, Cin)
    if Cin_p != Cin:
        w = jnp.pad(w, ((0, 0), (0, 0), (0, Cin_p - Cin)))
    w = w.astype(compute_dtype)
    b2d = bias.reshape(Cout, 1).astype(jnp.float32)

    kernel = functools.partial(_upconv_kernel, K=K, Wp=Wp, L=L)

    out_flat = pl.pallas_call(
        kernel,
        out_shape=jax.ShapeDtypeStruct((N, Cout, L), x_nchw.dtype),
        grid_spec=pltpu.PrefetchScalarGridSpec(
            num_scalar_prefetch=0,
            grid=(N,),
            in_specs=[
                pl.BlockSpec((1, Cin_p, Lp), lambda n: (n, 0, 0)),
                pl.BlockSpec((K * K, Cout, Cin_p), lambda n: (0, 0, 0)),
                pl.BlockSpec((Cout, 1), lambda n: (0, 0)),
            ],
            out_specs=pl.BlockSpec((1, Cout, L), lambda n: (n, 0, 0)),
        ),
        compiler_params=pltpu.CompilerParams(
            dimension_semantics=("parallel",)),
    )(x_flat, w, b2d)

    # Un-flatten and drop the K-1 (+ alignment) wrap-around columns.
    out = out_flat.reshape(N, Cout, Hu, Wp)[:, :, :, :Wu]
    return out


def _reference(x_nchw, weight_oihw, bias, *, kernel_size, upsampling_factor):
    """Pure-JAX f32 reference (lax conv) for correctness checking."""
    x = x_nchw
    if upsampling_factor > 1:
        s = upsampling_factor
        x = jnp.repeat(x, s, axis=2)
        x = jnp.repeat(x, s, axis=3)
    pad = kernel_size // 2
    x = jnp.pad(x, ((0, 0), (0, 0), (pad, pad), (pad, pad)), mode="reflect")
    out = jax.lax.conv_general_dilated(
        x, weight_oihw, window_strides=(1, 1), padding="VALID",
        dimension_numbers=("NCHW", "OIHW", "NCHW"))
    return out + bias[None, :, None, None]


if __name__ == "__main__":
    # Module config: UpsampleConvLayer(in_channels=4, out_channels=8, kernel_size=3, stride=2)
    in_channels, out_channels, kernel_size, stride = 4, 8, 3, 2
    N, H, W = 2, 16, 16  # upsampled to 32x32 before the conv

    key = jax.random.PRNGKey(0)
    kx, kw, kb = jax.random.split(key, 3)

    x = jax.random.normal(kx, (N, in_channels, H, W), dtype=jnp.float32)
    # Deterministic Conv2d-style init (uniform in +/- 1/sqrt(fan_in)).
    fan_in = in_channels * kernel_size * kernel_size
    bound = 1.0 / np.sqrt(fan_in)
    weight = jax.random.uniform(
        kw, (out_channels, in_channels, kernel_size, kernel_size),
        minval=-bound, maxval=bound, dtype=jnp.float32)
    bias = jax.random.uniform(kb, (out_channels,), minval=-bound, maxval=bound,
                              dtype=jnp.float32)

    out = upsample_conv_layer(x, weight, bias,
                              kernel_size=kernel_size,
                              upsampling_factor=stride)
    out = jax.block_until_ready(out)

    ref = jax.block_until_ready(
        _reference(x, weight, bias, kernel_size=kernel_size,
                   upsampling_factor=stride))

    assert out.shape == (N, out_channels, H * stride, W * stride), out.shape
    # Tolerance allows for bf16 inputs with f32 accumulation.
    if not np.allclose(np.asarray(out), np.asarray(ref), rtol=2e-2, atol=2e-2):
        raise AssertionError("Pallas upsample-conv does not match reference")

    print("KERNEL_OK")
</pallas_src>

<mosaic_0001>
module attributes {stable_mosaic.version = 11 : i64} {
  func.func @_upconv_kernel(%arg0: i32, %arg1: memref<1x8x1260xbf16, #tpu.memory_space<vmem>>, %arg2: memref<9x8x8xbf16, #tpu.memory_space<vmem>>, %arg3: memref<8x1xf32, #tpu.memory_space<vmem>>, %arg4: memref<1x8x1152xf32, #tpu.memory_space<vmem>>) attributes {dimension_semantics = [#tpu.dimension_semantics<parallel>], iteration_bounds = array<i64: 2>, scalar_prefetch = 0 : i64, scratch_operands = 0 : i64, tpu.core_type = #tpu.core_type<tc>, window_params = [{transform_indices = @transform_0, window_bounds = array<i64: 1, 8, 1260>}, {pipeline_mode = #tpu.pipeline_mode<synchronous>, transform_indices = @transform_1, window_bounds = array<i64: 9, 8, 8>}, {pipeline_mode = #tpu.pipeline_mode<synchronous>, transform_indices = @transform_2, window_bounds = array<i64: 8, 1>}, {transform_indices = @transform_3, window_bounds = array<i64: 1, 8, 1152>}]} {
    %cst = arith.constant 0.000000e+00 : f32
    %0 = vector.broadcast %cst : f32 to vector<8x1152xf32>
    %c0 = arith.constant 0 : index
    %c0_0 = arith.constant 0 : index
    %c0_1 = arith.constant 0 : index
    %1 = vector.load %arg1[%c0, %c0_0, %c0_1] : memref<1x8x1260xbf16, #tpu.memory_space<vmem>>, vector<1x8x1152xbf16>
    %2 = vector.shape_cast %1 : vector<1x8x1152xbf16> to vector<8x1152xbf16>
    %c0_2 = arith.constant 0 : index
    %c0_3 = arith.constant 0 : index
    %c0_4 = arith.constant 0 : index
    %3 = vector.load %arg2[%c0_2, %c0_3, %c0_4] : memref<9x8x8xbf16, #tpu.memory_space<vmem>>, vector<1x8x8xbf16>
    %4 = vector.shape_cast %3 : vector<1x8x8xbf16> to vector<8x8xbf16>
    %cst_5 = arith.constant dense<0.000000e+00> : vector<8x1152xf32>
    %5 = tpu.matmul %4, %2, %cst_5 {dimension_numbers = #tpu.dot_dimension_numbers<[1], [0], [0], [1], [0, 0, 1, 1], [], []>} : vector<8x8xbf16>, vector<8x1152xbf16>, vector<8x1152xf32> -> vector<8x1152xf32>
    %6 = arith.addf %0, %5 : vector<8x1152xf32>
    %c0_6 = arith.constant 0 : index
    %c0_7 = arith.constant 0 : index
    %c1 = arith.constant 1 : index
    %7 = vector.load %arg1[%c0_6, %c0_7, %c1] : memref<1x8x1260xbf16, #tpu.memory_space<vmem>>, vector<1x8x1152xbf16>
    %8 = vector.shape_cast %7 : vector<1x8x1152xbf16> to vector<8x1152xbf16>
    %c1_8 = arith.constant 1 : index
    %c0_9 = arith.constant 0 : index
    %c0_10 = arith.constant 0 : index
    %9 = vector.load %arg2[%c1_8, %c0_9, %c0_10] : memref<9x8x8xbf16, #tpu.memory_space<vmem>>, vector<1x8x8xbf16>
    %10 = vector.shape_cast %9 : vector<1x8x8xbf16> to vector<8x8xbf16>
    %cst_11 = arith.constant dense<0.000000e+00> : vector<8x1152xf32>
    %11 = tpu.matmul %10, %8, %cst_11 {dimension_numbers = #tpu.dot_dimension_numbers<[1], [0], [0], [1], [0, 0, 1, 1], [], []>} : vector<8x8xbf16>, vector<8x1152xbf16>, vector<8x1152xf32> -> vector<8x1152xf32>
    %12 = arith.addf %6, %11 : vector<8x1152xf32>
    %c0_12 = arith.constant 0 : index
    %c0_13 = arith.constant 0 : index
    %c2 = arith.constant 2 : index
    %13 = vector.load %arg1[%c0_12, %c0_13, %c2] : memref<1x8x1260xbf16, #tpu.memory_space<vmem>>, vector<1x8x1152xbf16>
    %14 = vector.shape_cast %13 : vector<1x8x1152xbf16> to vector<8x1152xbf16>
    %c2_14 = arith.constant 2 : index
    %c0_15 = arith.constant 0 : index
    %c0_16 = arith.constant 0 : index
    %15 = vector.load %arg2[%c2_14, %c0_15, %c0_16] : memref<9x8x8xbf16, #tpu.memory_space<vmem>>, vector<1x8x8xbf16>
    %16 = vector.shape_cast %15 : vector<1x8x8xbf16> to vector<8x8xbf16>
    %cst_17 = arith.constant dense<0.000000e+00> : vector<8x1152xf32>
    %17 = tpu.matmul %16, %14, %cst_17 {dimension_numbers = #tpu.dot_dimension_numbers<[1], [0], [0], [1], [0, 0, 1, 1], [], []>} : vector<8x8xbf16>, vector<8x1152xbf16>, vector<8x1152xf32> -> vector<8x1152xf32>
    %18 = arith.addf %12, %17 : vector<8x1152xf32>
    %c0_18 = arith.constant 0 : index
    %c0_19 = arith.constant 0 : index
    %c36 = arith.constant 36 : index
    %19 = vector.load %arg1[%c0_18, %c0_19, %c36] : memref<1x8x1260xbf16, #tpu.memory_space<vmem>>, vector<1x8x1152xbf16>
    %20 = vector.shape_cast %19 : vector<1x8x1152xbf16> to vector<8x1152xbf16>
    %c3 = arith.constant 3 : index
    %c0_20 = arith.constant 0 : index
    %c0_21 = arith.constant 0 : index
    %21 = vector.load %arg2[%c3, %c0_20, %c0_21] : memref<9x8x8xbf16, #tpu.memory_space<vmem>>, vector<1x8x8xbf16>
    %22 = vector.shape_cast %21 : vector<1x8x8xbf16> to vector<8x8xbf16>
    %cst_22 = arith.constant dense<0.000000e+00> : vector<8x1152xf32>
    %23 = tpu.matmul %22, %20, %cst_22 {dimension_numbers = #tpu.dot_dimension_numbers<[1], [0], [0], [1], [0, 0, 1, 1], [], []>} : vector<8x8xbf16>, vector<8x1152xbf16>, vector<8x1152xf32> -> vector<8x1152xf32>
    %24 = arith.addf %18, %23 : vector<8x1152xf32>
    %c0_23 = arith.constant 0 : index
    %c0_24 = arith.constant 0 : index
    %c37 = arith.constant 37 : index
    %25 = vector.load %arg1[%c0_23, %c0_24, %c37] : memref<1x8x1260xbf16, #tpu.memory_space<vmem>>, vector<1x8x1152xbf16>
    %26 = vector.shape_cast %25 : vector<1x8x1152xbf16> to vector<8x1152xbf16>
    %c4 = arith.constant 4 : index
    %c0_25 = arith.constant 0 : index
    %c0_26 = arith.constant 0 : index
    %27 = vector.load %arg2[%c4, %c0_25, %c0_26] : memref<9x8x8xbf16, #tpu.memory_space<vmem>>, vector<1x8x8xbf16>
    %28 = vector.shape_cast %27 : vector<1x8x8xbf16> to vector<8x8xbf16>
    %cst_27 = arith.constant dense<0.000000e+00> : vector<8x1152xf32>
    %29 = tpu.matmul %28, %26, %cst_27 {dimension_numbers = #tpu.dot_dimension_numbers<[1], [0], [0], [1], [0, 0, 1, 1], [], []>} : vector<8x8xbf16>, vector<8x1152xbf16>, vector<8x1152xf32> -> vector<8x1152xf32>
    %30 = arith.addf %24, %29 : vector<8x1152xf32>
    %c0_28 = arith.constant 0 : index
    %c0_29 = arith.constant 0 : index
    %c38 = arith.constant 38 : index
    %31 = vector.load %arg1[%c0_28, %c0_29, %c38] : memref<1x8x1260xbf16, #tpu.memory_space<vmem>>, vector<1x8x1152xbf16>
    %32 = vector.shape_cast %31 : vector<1x8x1152xbf16> to vector<8x1152xbf16>
    %c5 = arith.constant 5 : index
    %c0_30 = arith.constant 0 : index
    %c0_31 = arith.constant 0 : index
    %33 = vector.load %arg2[%c5, %c0_30, %c0_31] : memref<9x8x8xbf16, #tpu.memory_space<vmem>>, vector<1x8x8xbf16>
    %34 = vector.shape_cast %33 : vector<1x8x8xbf16> to vector<8x8xbf16>
    %cst_32 = arith.constant dense<0.000000e+00> : vector<8x1152xf32>
    %35 = tpu.matmul %34, %32, %cst_32 {dimension_numbers = #tpu.dot_dimension_numbers<[1], [0], [0], [1], [0, 0, 1, 1], [], []>} : vector<8x8xbf16>, vector<8x1152xbf16>, vector<8x1152xf32> -> vector<8x1152xf32>
    %36 = arith.addf %30, %35 : vector<8x1152xf32>
    %c0_33 = arith.constant 0 : index
    %c0_34 = arith.constant 0 : index
    %c72 = arith.constant 72 : index
    %37 = vector.load %arg1[%c0_33, %c0_34, %c72] : memref<1x8x1260xbf16, #tpu.memory_space<vmem>>, vector<1x8x1152xbf16>
    %38 = vector.shape_cast %37 : vector<1x8x1152xbf16> to vector<8x1152xbf16>
    %c6 = arith.constant 6 : index
    %c0_35 = arith.constant 0 : index
    %c0_36 = arith.constant 0 : index
    %39 = vector.load %arg2[%c6, %c0_35, %c0_36] : memref<9x8x8xbf16, #tpu.memory_space<vmem>>, vector<1x8x8xbf16>
    %40 = vector.shape_cast %39 : vector<1x8x8xbf16> to vector<8x8xbf16>
    %cst_37 = arith.constant dense<0.000000e+00> : vector<8x1152xf32>
    %41 = tpu.matmul %40, %38, %cst_37 {dimension_numbers = #tpu.dot_dimension_numbers<[1], [0], [0], [1], [0, 0, 1, 1], [], []>} : vector<8x8xbf16>, vector<8x1152xbf16>, vector<8x1152xf32> -> vector<8x1152xf32>
    %42 = arith.addf %36, %41 : vector<8x1152xf32>
    %c0_38 = arith.constant 0 : index
    %c0_39 = arith.constant 0 : index
    %c73 = arith.constant 73 : index
    %43 = vector.load %arg1[%c0_38, %c0_39, %c73] : memref<1x8x1260xbf16, #tpu.memory_space<vmem>>, vector<1x8x1152xbf16>
    %44 = vector.shape_cast %43 : vector<1x8x1152xbf16> to vector<8x1152xbf16>
    %c7 = arith.constant 7 : index
    %c0_40 = arith.constant 0 : index
    %c0_41 = arith.constant 0 : index
    %45 = vector.load %arg2[%c7, %c0_40, %c0_41] : memref<9x8x8xbf16, #tpu.memory_space<vmem>>, vector<1x8x8xbf16>
    %46 = vector.shape_cast %45 : vector<1x8x8xbf16> to vector<8x8xbf16>
    %cst_42 = arith.constant dense<0.000000e+00> : vector<8x1152xf32>
    %47 = tpu.matmul %46, %44, %cst_42 {dimension_numbers = #tpu.dot_dimension_numbers<[1], [0], [0], [1], [0, 0, 1, 1], [], []>} : vector<8x8xbf16>, vector<8x1152xbf16>, vector<8x1152xf32> -> vector<8x1152xf32>
    %48 = arith.addf %42, %47 : vector<8x1152xf32>
    %c0_43 = arith.constant 0 : index
    %c0_44 = arith.constant 0 : index
    %c74 = arith.constant 74 : index
    %49 = vector.load %arg1[%c0_43, %c0_44, %c74] : memref<1x8x1260xbf16, #tpu.memory_space<vmem>>, vector<1x8x1152xbf16>
    %50 = vector.shape_cast %49 : vector<1x8x1152xbf16> to vector<8x1152xbf16>
    %c8 = arith.constant 8 : index
    %c0_45 = arith.constant 0 : index
    %c0_46 = arith.constant 0 : index
    %51 = vector.load %arg2[%c8, %c0_45, %c0_46] : memref<9x8x8xbf16, #tpu.memory_space<vmem>>, vector<1x8x8xbf16>
    %52 = vector.shape_cast %51 : vector<1x8x8xbf16> to vector<8x8xbf16>
    %cst_47 = arith.constant dense<0.000000e+00> : vector<8x1152xf32>
    %53 = tpu.matmul %52, %50, %cst_47 {dimension_numbers = #tpu.dot_dimension_numbers<[1], [0], [0], [1], [0, 0, 1, 1], [], []>} : vector<8x8xbf16>, vector<8x1152xbf16>, vector<8x1152xf32> -> vector<8x1152xf32>
    %54 = arith.addf %48, %53 : vector<8x1152xf32>
    %c0_48 = arith.constant 0 : index
    %c0_49 = arith.constant 0 : index
    %55 = vector.load %arg3[%c0_48, %c0_49] : memref<8x1xf32, #tpu.memory_space<vmem>>, vector<8x1xf32>
    %56 = vector.broadcast %55 : vector<8x1xf32> to vector<8x1152xf32>
    %57 = arith.addf %54, %56 : vector<8x1152xf32>
    %c0_50 = arith.constant 0 : index
    %c0_51 = arith.constant 0 : index
    %c0_52 = arith.constant 0 : index
    %58 = vector.load %arg4[%c0_50, %c0_51, %c0_52] : memref<1x8x1152xf32, #tpu.memory_space<vmem>>, vector<1x8x1152xf32>
    %59 = vector.shape_cast %58 : vector<1x8x1152xf32> to vector<8x1152xf32>
    %60 = vector.shape_cast %57 : vector<8x1152xf32> to vector<1x8x1152xf32>
    tpu.vector_store %arg4[%c0_50, %c0_51, %c0_52], %60 {strides = array<i32>} : memref<1x8x1152xf32, #tpu.memory_space<vmem>>, vector<1x8x1152xf32>,
    return
  }
  func.func @transform_0(%arg0: i32) -> (i32, i32, i32) {
    %c0_i32 = arith.constant 0 : i32
    %c0_i32_0 = arith.constant 0 : i32
    %c0_i32_1 = arith.constant 0 : i32
    return %arg0, %c0_i32, %c0_i32_0 : i32, i32, i32
  }
  func.func @transform_1(%arg0: i32) -> (i32, i32, i32) {
    %c0_i32 = arith.constant 0 : i32
    %c0_i32_0 = arith.constant 0 : i32
    %c0_i32_1 = arith.constant 0 : i32
    %c0_i32_2 = arith.constant 0 : i32
    return %c0_i32, %c0_i32_0, %c0_i32_1 : i32, i32, i32
  }
  func.func @transform_2(%arg0: i32) -> (i32, i32) {
    %c0_i32 = arith.constant 0 : i32
    %c0_i32_0 = arith.constant 0 : i32
    %c0_i32_1 = arith.constant 0 : i32
    return %c0_i32, %c0_i32_0 : i32, i32
  }
  func.func @transform_3(%arg0: i32) -> (i32, i32, i32) {
    %c0_i32 = arith.constant 0 : i32
    %c0_i32_0 = arith.constant 0 : i32
    %c0_i32_1 = arith.constant 0 : i32
    return %arg0, %c0_i32, %c0_i32_0 : i32, i32, i32
  }
}

</mosaic_0001>

<bundles_post_ra>
// kernel: tpu_custom_call.1
= control target key start
LH: loop header
LB: loop body
LE: loop exit
PB: predicated region body
PF: predicated region fallthrough
CT: control target
= control target key end

     0   :  { %8 = vsyncpa [#allocation3], 0  ;;  %s3740_s0 = inlined_call_operand.hbm [shape: bf16[2,8,1260], index: 0, kind: input, shape index: {}]   ;;  %s3741_s1 = inlined_call_operand.vmem [shape: bf16[9,8,8], index: 1, kind: input, shape index: {}]   ;;  %s3742_s2 = inlined_call_operand.vmem [shape: f32[8,1], index: 2, kind: input, shape index: {}]   ;;  %s3743_s3 = inlined_call_operand.hbm [shape: f32[2,8,1152], index: 3, kind: output, shape index: {}]  }
   0x1   :  { %10 = vsyncpa [#allocation3 + $0x1], 0 }
   0x2   :  { %11 = vsyncpa [#allocation4], 0 }
   0x3   :  { %13 = vsyncpa [#allocation4 + $0x1], 0  ;;  %s3144_s12 = smov 0   ;;  %s3146_s13 = smov 0  }
   0x4   :  { %s3148_s14 = smov 0   ;;  %s3150_s15 = smov 0  }
   0x5 LB: > { %s3165_s16 = sadd.s32 4294967295, %s3109_s15   ;;  %s2759_s17 = sadd.s32 4294967294, %s3109_s15   ;;  %s3109_s15 = sphi %s3150_s15, %s3757_s15   ;;  %s3105_s14 = sphi %s3148_s14, %s3756_s14   ;;  %s3101_s13 = sphi %s3146_s13, %s3755_s13   ;;  %s3097_s12 = sphi %s3144_s12, %s3754_s12  }
   0x6   : > { %s3169_s18 = sadd.s32 1, %s3109_s15   ;;  %s26_s19 = sadd.s32 1, %s3105_s14 }
   0x7   : > { %s23_s20 = ssub.s32 %s3109_s15, %s3169_s18  ;;  %p33_p0 = scmp.ne.s32.totalorder %s3105_s14, %s3101_s13 }
   0x8   : > { %p24_p1 = scmp.eq.s32.totalorder %s23_s20, 0  ;;  %p34_p2 = scmp.eq.s32.totalorder %s3109_s15, 0 }
   0x9   : > { %p39_p3 = scmp.ne.s32.totalorder %s3101_s13, %s3097_s12  ;;  %p40_p4 = scmp.eq.s32.totalorder %s3165_s16, 0 }
   0xa   : > { %s3181_s21 = scalar_select %p24_p1, %s3105_s14, %s26_s19  }
   0xb   : > { %p35_p5 = por %p34_p2, %p33_p0  ;;  %p3183_p6 = por %p40_p4, %p39_p3 }
   0xc   : > { %p105_p7 = scmp.eq.s32.totalorder %s3165_s16, 1  ;;  %p111_p8 = scmp.eq.s32.totalorder %s2759_s17, 1 }
   0xd   : > { %p2956_p10 = scmp.lt.s32.totalorder %s3109_s15, 2  ;;  %s137_s25 = sand.u32 1, %s3105_s14  }
   0xe   : > { %p3190_p11 = por %p105_p7, %p33_p0  ;;  %p3194_p12 = por %p111_p8, %p39_p3 }
   0xf   : > { %s2940_s26 = smul.u32 640, %s3109_s15  ;;  %p3205_p13 = pnand %p2956_p10, %p35_p5 }
  0x10   : > { %s3746_s23 = scalar_select %p3190_p11, 1, 0 }
  0x11   : > { %s3747_s24 = scalar_select %p3194_p12, 1, 0 }
  0x12   : > { %s2939_s27 = smul.u32 40, %s137_s25  ;;  %s3203_s30 = scalar_lea.hbm %s3740_s0, %s2940_s26 }
  0x13   : > { %s138_s7 = scalar_lea.sflag [#allocation3], %s137_s25  ;;  %s3013_s8 = scalar_lea.hbm %s3203_s30, 640 }
  0x14   : > { %s141_s5 = scalar_lea.vmem [#allocation2], %s2939_s27  ;;  %p3014_p2 = scmp.ne.s32.totalorder %s3203_s30, %s3013_s8 }
  0x15   : > { %s149_s6 = sshll.u32 %s141_s5, 4  ;;  %p3015_p3 = pneg %p3205_p13  ;;  %s3210_s6 = int_to_ptr.vmem [resolvable:$true] %s149_s6 }
  0x16   : > { %s3018_s11 = scalar_lea.hbm %s3740_s0, 1280  ;;  %p3019_p7 = scmp.lt.u32.totalorder %s3203_s30, %s3740_s0 }
  0x17   : > { %p3016_p4 = pnand %p3015_p3, %p3014_p2  ;;  %p3020_p8 = scmp.lt.u32.totalorder %s3018_s11, %s3013_s8 }
  0x18   : > { %p3022_p9 = scmp.lt.u32.totalorder %s3013_s8, %s3203_s30 }
  0x19   : > { %p3017_p5 = pneg %p3016_p4  ;;  %p3021_p10 = por %p3020_p8, %p3019_p7 }
  0x1b   : > { %p3023_p0 = por %p3022_p9, %p3021_p10 }
  0x1d   : > { %p3024_p1 = pnand %p3023_p0, %p3017_p5 }
  0x1f   : > { %3027 = shalt.err (!%p3024_p1)
}
  0x20   : > { %s3028_s20 = scalar_lea.vmem %s3210_s6, 640  ;;  %s3111_s25 = smov [#allocation2]  }
  0x21   : > { %p3029_p2 = scmp.ne.s32.totalorder %s3210_s6, %s3028_s20  ;;  %s3033_s26 = sshll.u32 %s3111_s25, 4  ;;  %s3034_s26 = int_to_ptr.vmem [resolvable:$false] %s3033_s26 }
  0x22   : > { %s3035_s27 = scalar_lea.vmem %s3034_s26, 1280  ;;  %p3036_p11 = scmp.lt.s32.totalorder %s3210_s6, %s3034_s26 }
  0x23   : > { %p3031_p4 = pnand %p3029_p2, %p3015_p3  ;;  %p3037_p7 = scmp.lt.s32.totalorder %s3035_s27, %s3028_s20 }
  0x25   : > { %p3032_p12 = pneg %p3031_p4  ;;  %p3038_p8 = por %p3037_p7, %p3036_p11 }
  0x27   : > { %p3039_p9 = pnand %p3038_p8, %p3032_p12 }
  0x29   : > { %3042 = shalt.err (!%p3039_p9)
}
  0x2a   : > { %2951 = dma.hbm_to_vmem [thread:$0]  (!%p3205_p13), %s3203_s30, 640, %s3210_s6, %s138_s7  }
  0x2b   : > { %p3749_p0 = scmp.lt.s32.totalorder %s3109_s15, 3  ;;  %p3750_p1 = scmp.ge.s32.totalorder %s3109_s15, 1 }
  0x2d   : > { %p155_p3 = pnand %p3750_p1, %p3749_p0 }
  0x2e   : > { %s3243_s28 = sand.u32 (!%p155_p3), 1, %s3101_s13  }
  0x2f   : > { %158 = sbr.rel (%p155_p3) target bundleno = 588 (0x24c), region = 32  ;;  %s161_s5 = scalar_lea.sflag (!%p155_p3), [#allocation3], %s3243_s28 }
  0x30   : > { %s2941_s29 = smul.u32 (!%p155_p3), 40, %s3243_s28 }
  0x32   : > { %s3247_s8 = scalar_lea.vmem (!%p155_p3), [#allocation2], %s2941_s29 }
  0x36   : > { %3088 = dma.done.wait (%p3183_p6), %s161_s5, 640  }
  0x37   : > { %3090 = vsyncadd (%p3183_p6), %s161_s5, 4294966656  ;;  %v3112_v0 = vmov 0   ;;  %v189_v1 = vld [vmem:[%s3247_s8 + $0x8] sm:$0xff]  ;;  %v188_v2 = vld [vmem:[%s3247_s8] sm:$0xff]  ;;  %s3113_s22 = smov 127   ;;  %s3114_s30 = smov 126  }
  0x38   : > { %316 = vmatprep.mubr.bf16.mxu0 %v3112_v0  ;;  %357 = vmatprep.mubr.bf16.mxu1 %v3112_v0  ;;  %v3258_v3 = vcombine.low %v189_v1, %v189_v1  ;;  %v3260_v4 = vcombine.low %v188_v2, %v188_v2  ;;  %v3264_v5 = vcombine.high %v189_v1, %v189_v1  ;;  %v190_v7 = vld [vmem:[%s3247_s8 + $0x10] sm:$0xff]  ;;  %v191_v10 = vld [vmem:[%s3247_s8 + $0x18] sm:$0xff]  ;;  %v194_v13 = vld [vmem:[%s3247_s8 + $0x20] sm:$0xff]  ;;  %s3115_s4 = smov 92   ;;  %s3116_s6 = smov 91   ;;  %vm242_vm0 = vcmask 1039360  }
  0x39   : > { %3001 = vset.pattern.permute.xlu0 %v3112_v0  ;;  %v3266_v6 = vcombine.high %v188_v2, %v188_v2  ;;  %v3271_v8 = vcombine.high %v190_v7, %v190_v7  ;;  %v3273_v9 = vcombine.low %v190_v7, %v190_v7  ;;  %v3278_v11 = vcombine.high %v191_v10, %v191_v10  ;;  %s3117_s7 = smov 90   ;;  %s3118_s9 = smov 56   ;;  %v2764_v23 = vld [vmem:[%s3741_s1 + $0x4] sm:$0xf]  ;;  %v193_v48 = vld [vmem:[%s3741_s1] sm:$0xf] }
  0x3a   : > { %226 = vrot.lane.b32.xlu1 %v3258_v3, %s3113_s22  ;;  %222 = vrot.lane.b32.xlu0 %v3260_v4, %s3113_s22  ;;  %v3280_v12 = vcombine.low %v191_v10, %v191_v10  ;;  %v3285_v14 = vcombine.low %v194_v13, %v194_v13  ;;  %v3287_v15 = vcombine.high %v194_v13, %v194_v13  ;;  %vm256_vm1 = vcmask 1043456   ;;  %s3119_s10 = smov 55   ;;  %s3122_s25 = smov 54   ;;  %v3012_v53 = vld [vmem:[%s3247_s8 + $0x20] ss:$0 sps:$4 sm:$0xff]  }
  0x3b   : > { %vm252_vm2 = vcmask 64512   ;;  %v3120_v37 = vmov 0.0   ;;  %vm3121_vm3 = vmmov 0   ;;  %v495_v42 = vsel %vm256_vm1, %v3260_v4, 0  ;;  %s2943_s27 = smul.u32 1152, %s3165_s16  ;;  %s2675_s16 = scalar_lea.sflag [#allocation4], %s3243_s28 }
  0x3c   : > { %v501_v45 = vsel %vm256_vm1, %v3258_v3, 0  ;;  %v507_v49 = vsel %vm256_vm1, %v3273_v9, 0  ;;  %vm747_vm4 = vcmask 1031168   ;;  %v513_v52 = vsel %vm256_vm1, %v3280_v12, 0  ;;  %p3751_p11 = scmp.ne.s32.totalorder %s3746_s23, 0 }
  0x3d   : > { %v519_v57 = vsel %vm256_vm1, %v3012_v53, 0  ;;  %vm1022_vm5 = vcmask 752640   ;;  %vm1297_vm6 = vcmask 744448   ;;  %vm1572_vm7 = vcmask 736256  }
  0x3e   : > { %228 = vrot.lane.b32.xlu1 %v3264_v5, %s3113_s22  ;;  %224 = vrot.lane.b32.xlu0 %v3266_v6, %s3113_s22  ;;  %vm1847_vm8 = vcmask 457728   ;;  %vm2122_vm9 = vcmask 449536   ;;  %vm2397_vm10 = vcmask 441344  }
  0x42   : > { %232 = vrot.lane.b32.xlu1 %v3271_v8, %s3113_s22  ;;  %230 = vrot.lane.b32.xlu0 %v3273_v9, %s3113_s22 }
  0x46   : > { %236 = vrot.lane.b32.xlu1 %v3278_v11, %s3113_s22  ;;  %234 = vrot.lane.b32.xlu0 %v3280_v12, %s3113_s22 }
  0x4a   : > { %238 = vrot.lane.b32.xlu0 %v3285_v14, %s3113_s22  ;;  %240 = vrot.lane.b32.xlu1 %v3287_v15, %s3113_s22  ;;  %s3695_s22 = scalar_lea.hbm %s3743_s3, %s2943_s27 }
  0x4e   : > { %727 = vrot.lane.b32.xlu0 %v3260_v4, %s3114_s30  ;;  %729 = vrot.lane.b32.xlu1 %v3266_v6, %s3114_s30 }
  0x52   : > { %731 = vrot.lane.b32.xlu0 %v3258_v3, %s3114_s30  ;;  %733 = vrot.lane.b32.xlu1 %v3264_v5, %s3114_s30 }
  0x56   : > { %735 = vrot.lane.b32.xlu0 %v3273_v9, %s3114_s30  ;;  %737 = vrot.lane.b32.xlu1 %v3271_v8, %s3114_s30 }
  0x5a   : > { %739 = vrot.lane.b32.xlu0 %v3280_v12, %s3114_s30  ;;  %741 = vrot.lane.b32.xlu1 %v3278_v11, %s3114_s30 }
  0x5e   : > { %743 = vrot.lane.b32.xlu0 %v3285_v14, %s3114_s30  ;;  %745 = vrot.lane.b32.xlu1 %v3287_v15, %s3114_s30 }
  0x62   : > { %1002 = vrot.lane.b32.xlu0 %v3260_v4, %s3115_s4  ;;  %1004 = vrot.lane.b32.xlu1 %v3266_v6, %s3115_s4 }
  0x66   : > { %1006 = vrot.lane.b32.xlu0 %v3258_v3, %s3115_s4  ;;  %1008 = vrot.lane.b32.xlu1 %v3264_v5, %s3115_s4 }
  0x6a   : > { %1010 = vrot.lane.b32.xlu0 %v3273_v9, %s3115_s4  ;;  %1012 = vrot.lane.b32.xlu1 %v3271_v8, %s3115_s4 }
  0x6e   : > { %1014 = vrot.lane.b32.xlu0 %v3280_v12, %s3115_s4  ;;  %1016 = vrot.lane.b32.xlu1 %v3278_v11, %s3115_s4 }
  0x72   : > { %1018 = vrot.lane.b32.xlu0 %v3285_v14, %s3115_s4  ;;  %1020 = vrot.lane.b32.xlu1 %v3287_v15, %s3115_s4  ;;  %s3123_s4 = smov [#allocation5]  }
  0x76   : > { %1277 = vrot.lane.b32.xlu0 %v3260_v4, %s3116_s6  ;;  %1279 = vrot.lane.b32.xlu1 %v3266_v6, %s3116_s6 }
  0x7a   : > { %1281 = vrot.lane.b32.xlu0 %v3258_v3, %s3116_s6  ;;  %1283 = vrot.lane.b32.xlu1 %v3264_v5, %s3116_s6 }
  0x7e   : > { %1285 = vrot.lane.b32.xlu0 %v3273_v9, %s3116_s6  ;;  %1287 = vrot.lane.b32.xlu1 %v3271_v8, %s3116_s6 }
  0x82   : > { %1289 = vrot.lane.b32.xlu0 %v3280_v12, %s3116_s6  ;;  %1291 = vrot.lane.b32.xlu1 %v3278_v11, %s3116_s6 }
  0x86   : > { %1293 = vrot.lane.b32.xlu0 %v3285_v14, %s3116_s6  ;;  %1295 = vrot.lane.b32.xlu1 %v3287_v15, %s3116_s6  ;;  %s3047_s6 = sshll.u32 %s3123_s4, 4  ;;  %s3048_s6 = int_to_ptr.vmem [resolvable:$false] %s3047_s6 }
  0x8a   : > { %1552 = vrot.lane.b32.xlu0 %v3260_v4, %s3117_s7  ;;  %1554 = vrot.lane.b32.xlu1 %v3266_v6, %s3117_s7 }
  0x8e   : > { %1556 = vrot.lane.b32.xlu0 %v3258_v3, %s3117_s7  ;;  %1558 = vrot.lane.b32.xlu1 %v3264_v5, %s3117_s7 }
  0x92   : > { %1560 = vrot.lane.b32.xlu0 %v3273_v9, %s3117_s7  ;;  %1562 = vrot.lane.b32.xlu1 %v3271_v8, %s3117_s7 }
  0x96   : > { %1564 = vrot.lane.b32.xlu0 %v3280_v12, %s3117_s7  ;;  %1566 = vrot.lane.b32.xlu1 %v3278_v11, %s3117_s7 }
  0x9a   : > { %1568 = vrot.lane.b32.xlu0 %v3285_v14, %s3117_s7  ;;  %1570 = vrot.lane.b32.xlu1 %v3287_v15, %s3117_s7  ;;  %s3049_s7 = scalar_lea.vmem %s3048_s6, 2304 }
  0x9e   : > { %1827 = vrot.lane.b32.xlu0 %v3260_v4, %s3118_s9  ;;  %1829 = vrot.lane.b32.xlu1 %v3266_v6, %s3118_s9 }
  0xa2   : > { %1831 = vrot.lane.b32.xlu0 %v3258_v3, %s3118_s9  ;;  %1833 = vrot.lane.b32.xlu1 %v3264_v5, %s3118_s9 }
  0xa6   : > { %1835 = vrot.lane.b32.xlu0 %v3273_v9, %s3118_s9  ;;  %1837 = vrot.lane.b32.xlu1 %v3271_v8, %s3118_s9 }
  0xaa   : > { %1839 = vrot.lane.b32.xlu0 %v3280_v12, %s3118_s9  ;;  %1841 = vrot.lane.b32.xlu1 %v3278_v11, %s3118_s9 }
  0xac   : > { %v227_v16 = vpop.permute.xlu1 %226  ;;  %v223_v17 = vpop.permute.xlu0 %222 }
  0xae   : > { %1843 = vrot.lane.b32.xlu0 %v3285_v14, %s3118_s9  ;;  %1845 = vrot.lane.b32.xlu1 %v3287_v15, %s3118_s9 }
  0xb0   : > { %v229_v18 = vpop.permute.xlu1 %228  ;;  %v225_v19 = vpop.permute.xlu0 %224 }
  0xb1   : > { %v244_v20 = vsel %vm242_vm0, %v225_v19, %v227_v16  ;;  %v243_v21 = vsel %vm242_vm0, %v223_v17, %v225_v19  ;;  %v245_v24 = vsel %vm242_vm0, %v227_v16, %v229_v18 }
  0xb2   : > { %2775 = vmatprep.subr.msk.bf16.mxu0 %vm256_vm1, %v244_v20  ;;  %v258_v22 = vsel %vm256_vm1, %v243_v21, 0  ;;  %2102 = vrot.lane.b32.xlu0 %v3260_v4, %s3119_s10  ;;  %v264_v28 = vsel %vm256_vm1, %v245_v24, 0 }
  0xb3   : > { %285 = vmatpush1.bf16.msra.mxu0 %v258_v22  ;;  %2104 = vrot.lane.b32.xlu1 %v3266_v6, %s3119_s10 }
  0xb4   : > { %v233_v25 = vpop.permute.xlu1 %232  ;;  %v231_v26 = vpop.permute.xlu0 %230 }
  0xb5   : > { %v246_v27 = vsel %vm242_vm0, %v229_v18, %v231_v26  ;;  %v247_v29 = vsel %vm242_vm0, %v231_v26, %v233_v25 }
  0xb6   : > { %2776 = vmatmul.mubr.msk.bf16.vlgmr.msra.gmra.mrb[0].mxu0 %vm252_vm2, %v2764_v23  ;;  %2777 = vmatprep.subr.msk.bf16.mxu1 %vm256_vm1, %v246_v27  ;;  %v270_v33 = vsel %vm256_vm1, %v247_v29, 0 }
  0xb7   : > { %326 = vmatpush1.bf16.msra.mxu1 %v264_v28  ;;  %398 = vmatprep.mubr.bf16.mxu0 %v3112_v0 }
  0xb8   : > { %v237_v30 = vpop.permute.xlu1 %236  ;;  %v235_v31 = vpop.permute.xlu0 %234  ;;  %2106 = vrot.lane.b32.xlu0 %v3258_v3, %s3119_s10  ;;  %2108 = vrot.lane.b32.xlu1 %v3264_v5, %s3119_s10 }
  0xb9   : > { %v248_v32 = vsel %vm242_vm0, %v233_v25, %v235_v31  ;;  %v249_v34 = vsel %vm242_vm0, %v235_v31, %v237_v30 }
  0xba   : > { %2778 = vmatmul.mubr.msk.bf16.vlgmr.msra.gmra.mrb[0].mxu1 %vm252_vm2, %v2764_v23  ;;  %2779 = vmatprep.subr.msk.bf16.mxu0 %vm256_vm1, %v248_v32  ;;  %v276_v40 = vsel %vm256_vm1, %v249_v34, 0  ;;  %v2804_v34 = vld [vmem:[%s3741_s1 + $0xc] sm:$0xf] }
  0xbb   : > { %367 = vmatpush1.bf16.msra.mxu0 %v270_v33  ;;  %439 = vmatprep.mubr.bf16.mxu1 %v3112_v0 }
  0xbc   : > { %v239_v35 = vpop.permute.xlu0 %238  ;;  %v241_v36 = vpop.permute.xlu1 %240  ;;  %2885 = vmatprep.subr.bf16.mxu0 %v3120_v37  ;;  %2110 = vrot.lane.b32.xlu0 %v3273_v9, %s3119_s10 }
  0xbd   : > { %v250_v38 = vsel %vm242_vm0, %v237_v30, %v239_v35  ;;  %v251_v39 = vsel %vm242_vm0, %v239_v35, %v241_v36  ;;  %2112 = vrot.lane.b32.xlu1 %v3271_v8, %s3119_s10 }
  0xbe   : > { %2780 = vmatmul.mubr.msk.bf16.vlgmr.msra.gmra.mrb[4].mxu0 %vm252_vm2, %v2764_v23  ;;  %2781 = vmatprep.subr.msk.bf16.mxu1 %vm256_vm1, %v250_v38  ;;  %v282_v41 = vsel %vm256_vm1, %v251_v39, 0 }
  0xbf   : > { %408 = vmatpush1.bf16.msra.mxu1 %v276_v40  ;;  %2886 = vmatpush3.bf16.msra.mxu0 %v282_v41 }
  0xc0   : > { %2887 = vmatprep.mubr.msk.bf16.mxu0 %vm3121_vm3, %v3120_v37  ;;  %2785 = vmatprep.subr.msk.bf16.mxu1 %vm256_vm1, %v3266_v6  ;;  %v728_v43 = vpop.permute.xlu0 %727  ;;  %v730_v44 = vpop.permute.xlu1 %729 }
  0xc1   : > { %2787 = vmatprep.subr.msk.bf16.mxu0 %vm256_vm1, %v3264_v5  ;;  %2114 = vrot.lane.b32.xlu0 %v3280_v12, %s3119_s10  ;;  %v748_v60 = vsel %vm747_vm4, %v728_v43, %v730_v44 }
  0xc2   : > { %2782 = vmatmul.mubr.msk.bf16.vlgmr.msra.gmra.mrb[4].mxu1 %vm252_vm2, %v2764_v23  ;;  %2116 = vrot.lane.b32.xlu1 %v3278_v11, %s3119_s10  ;;  %v761_v62 = vsel %vm256_vm1, %v748_v60, 0  ;;  %v2814_v60 = vld [vmem:[%s3741_s1 + $0x10] sm:$0xf] }
  0xc3   : > { %522 = vmatpush1.bf16.msra.mxu1 %v495_v42  ;;  %553 = vmatprep.mubr.bf16.mxu1 %v3112_v0 }
  0xc4   : > { %2789 = vmatprep.subr.msk.bf16.mxu1 %vm256_vm1, %v3271_v8  ;;  %v732_v46 = vpop.permute.xlu0 %731  ;;  %v734_v47 = vpop.permute.xlu1 %733 }
  0xc5   : > { %2118 = vrot.lane.b32.xlu0 %v3285_v14, %s3119_s10  ;;  %v749_v56 = vsel %vm747_vm4, %v730_v44, %v732_v46  ;;  %v750_v2 = vsel %vm747_vm4, %v732_v46, %v734_v47 }
  0xc6   : > { %2888 = vmatmul.mubr.msk.bf16.vlgmr.msra.gmra.mrb[8].mxu0 %vm252_vm2, %v2764_v23  ;;  %2120 = vrot.lane.b32.xlu1 %v3287_v15, %s3119_s10 }
  0xc7   : > { %563 = vmatpush1.bf16.msra.mxu0 %v501_v45  ;;  %594 = vmatprep.mubr.bf16.mxu0 %v3112_v0 }
  0xc8   : > { %2791 = vmatprep.subr.msk.bf16.mxu0 %vm256_vm1, %v3278_v11  ;;  %v736_v50 = vpop.permute.xlu0 %735  ;;  %v738_v51 = vpop.permute.xlu1 %737 }
  0xc9   : > { %2377 = vrot.lane.b32.xlu0 %v3260_v4, %s3122_s25  ;;  %v751_v61 = vsel %vm747_vm4, %v734_v47, %v736_v50  ;;  %v767_v4 = vsel %vm256_vm1, %v750_v2, 0  ;;  %v752_v7 = vsel %vm747_vm4, %v736_v50, %v738_v51 }
  0xca   : > { %2786 = vmatmul.mubr.msk.bf16.vlgmr.msra.gmra.mrb[8].mxu1 %vm252_vm2, %v193_v48  ;;  %2379 = vrot.lane.b32.xlu1 %v3266_v6, %s3122_s25  ;;  %v773_v10 = vsel %vm256_vm1, %v752_v7, 0 }
  0xcb   : > { %604 = vmatpush1.bf16.msra.mxu1 %v507_v49  ;;  %635 = vmatprep.mubr.bf16.mxu1 %v3112_v0 }
  0xcc   : > { %2891 = vmatprep.subr.bf16.mxu1 %v3120_v37  ;;  %v740_v54 = vpop.permute.xlu0 %739  ;;  %v742_v55 = vpop.permute.xlu1 %741 }
  0xcd   : > { %2381 = vrot.lane.b32.xlu0 %v3258_v3, %s3122_s25  ;;  %v753_v3 = vsel %vm747_vm4, %v738_v51, %v740_v54  ;;  %v754_v13 = vsel %vm747_vm4, %v740_v54, %v742_v55 }
  0xce   : > { %2788 = vmatmul.mubr.msk.bf16.vlgmr.msra.gmra.mrb[12].mxu0 %vm252_vm2, %v193_v48  ;;  %2383 = vrot.lane.b32.xlu1 %v3264_v5, %s3122_s25 }
  0xcf   : > { %645 = vmatpush1.bf16.msra.mxu0 %v513_v52  ;;  %676 = vmatprep.mubr.bf16.mxu0 %v3112_v0 }
  0xd0   : > { %2795 = vmatprep.subr.msk.bf16.mxu0 %vm256_vm1, %v749_v56  ;;  %v744_v58 = vpop.permute.xlu0 %743  ;;  %v746_v59 = vpop.permute.xlu1 %745 }
  0xd1   : > { %2385 = vrot.lane.b32.xlu0 %v3273_v9, %s3122_s25  ;;  %v2794_v9 = vld [vmem:[%s3741_s1 + $0x8] sm:$0xf]  ;;  %v756_v17 = vsel %vm747_vm4, %v744_v58, %v746_v59 }
  0xd2   : > { %2790 = vmatmul.mubr.msk.bf16.vlgmr.msra.gmra.mrb[12].mxu1 %vm252_vm2, %v193_v48  ;;  %2387 = vrot.lane.b32.xlu1 %v3271_v8, %s3122_s25  ;;  %v755_v8 = vsel %vm747_vm4, %v742_v55, %v744_v58  ;;  %v785_v19 = vsel %vm256_vm1, %v756_v17, 0 }
  0xd3   : > { %2892 = vmatpush3.bf16.msra.mxu1 %v519_v57  ;;  %2893 = vmatprep.mubr.msk.bf16.mxu1 %vm3121_vm3, %v3120_v37 }
  0xd4   : > { %2797 = vmatprep.subr.msk.bf16.mxu1 %vm256_vm1, %v751_v61  ;;  %v1003_v63 = vpop.permute.xlu0 %1002  ;;  %v1005_v1 = vpop.permute.xlu1 %1004 }
  0xd5   : > { %2389 = vrot.lane.b32.xlu0 %v3280_v12, %s3122_s25  ;;  %v1023_v22 = vsel %vm1022_vm5, %v1003_v63, %v1005_v1 }
  0xd6   : > { %2792 = vmatmul.mubr.msk.bf16.vlgmr.msra.gmra.mrb[16].mxu0 %vm252_vm2, %v193_v48  ;;  %2391 = vrot.lane.b32.xlu1 %v3278_v11, %s3122_s25  ;;  %v1036_v24 = vsel %vm256_vm1, %v1023_v22, 0  ;;  %v2824_v22 = vld [vmem:[%s3741_s1 + $0x14] sm:$0xf] }
  0xd7   : > { %788 = vmatpush1.bf16.msra.mxu0 %v761_v62  ;;  %819 = vmatprep.mubr.bf16.mxu0 %v3112_v0 }
  0xd8   : > { %2799 = vmatprep.subr.msk.bf16.mxu0 %vm256_vm1, %v753_v3  ;;  %v1007_v5 = vpop.permute.xlu0 %1006  ;;  %v1009_v6 = vpop.permute.xlu1 %1008 }
  0xd9   : > { %2393 = vrot.lane.b32.xlu0 %v3285_v14, %s3122_s25  ;;  %v779_v14 = vsel %vm256_vm1, %v754_v13, 0  ;;  %v1024_v18 = vsel %vm1022_vm5, %v1005_v1, %v1007_v5  ;;  %v1025_v27 = vsel %vm1022_vm5, %v1007_v5, %v1009_v6 }
  0xda   : > { %2894 = vmatmul.mubr.msk.bf16.vlgmr.msra.gmra.mrb[16].mxu1 %vm252_vm2, %v193_v48  ;;  %2395 = vrot.lane.b32.xlu1 %v3287_v15, %s3122_s25  ;;  %v1042_v29 = vsel %vm256_vm1, %v1025_v27, 0  ;;  %s2942_s25 = smul.u32 72, %s3243_s28 }
  0xdb   : > { %829 = vmatpush1.bf16.msra.mxu1 %v767_v4  ;;  %860 = vmatprep.mubr.bf16.mxu1 %v3112_v0 }
  0xdc   : > { %2801 = vmatprep.subr.msk.bf16.mxu1 %vm256_vm1, %v755_v8  ;;  %v1011_v11 = vpop.permute.xlu0 %1010  ;;  %v1013_v12 = vpop.permute.xlu1 %1012  ;;  %s3680_s26 = scalar_lea.vmem [#allocation5], %s2942_s25 }
  0xdd   : > { %v1026_v23 = vsel %vm1022_vm5, %v1009_v6, %v1011_v11  ;;  %v1027_v32 = vsel %vm1022_vm5, %v1011_v11, %v1013_v12  ;;  %s2689_s29 = sshll.u32 %s3680_s26, 4  ;;  %s3697_s29 = int_to_ptr.vmem [resolvable:$true] %s2689_s29 }
  0xde   : > { %2796 = vmatmul.mubr.msk.bf16.vlgmr.msra.gmra.mrb[20].mxu0 %vm252_vm2, %v2794_v9  ;;  %v1048_v35 = vsel %vm256_vm1, %v1027_v32, 0  ;;  %s3043_s30 = scalar_lea.vmem %s3697_s29, 1152  ;;  %p3050_p5 = scmp.lt.s32.totalorder %s3697_s29, %s3048_s6 }
  0xdf   : > { %870 = vmatpush1.bf16.msra.mxu0 %v773_v10  ;;  %901 = vmatprep.mubr.bf16.mxu0 %v3112_v0  ;;  %p3044_p6 = scmp.ne.s32.totalorder %s3697_s29, %s3043_s30  ;;  %p3051_p10 = scmp.lt.s32.totalorder %s3049_s7, %s3043_s30 }
  0xe0   : > { %2897 = vmatprep.subr.bf16.mxu0 %v3120_v37  ;;  %v1015_v15 = vpop.permute.xlu0 %1014  ;;  %v1017_v16 = vpop.permute.xlu1 %1016 }
  0xe1   : > { %v1028_v28 = vsel %vm1022_vm5, %v1013_v12, %v1015_v15  ;;  %v1029_v39 = vsel %vm1022_vm5, %v1015_v15, %v1017_v16  ;;  %p3045_p12 = pnand %p3044_p6, %p3751_p11  ;;  %p3052_p2 = por %p3051_p10, %p3050_p5 }
  0xe2   : > { %2798 = vmatmul.mubr.msk.bf16.vlgmr.msra.gmra.mrb[20].mxu1 %vm252_vm2, %v2794_v9  ;;  %v1054_v40 = vsel %vm256_vm1, %v1029_v39, 0 }
  0xe3   : > { %911 = vmatpush1.bf16.msra.mxu1 %v779_v14  ;;  %942 = vmatprep.mubr.bf16.mxu1 %v3112_v0  ;;  %p3046_p13 = pneg %p3045_p12 }
  0xe4   : > { %2805 = vmatprep.subr.msk.bf16.mxu1 %vm256_vm1, %v1024_v18  ;;  %v1019_v20 = vpop.permute.xlu0 %1018  ;;  %v1021_v21 = vpop.permute.xlu1 %1020 }
  0xe5   : > { %v1030_v33 = vsel %vm1022_vm5, %v1017_v16, %v1019_v20  ;;  %v1031_v43 = vsel %vm1022_vm5, %v1019_v20, %v1021_v21  ;;  %p3053_p4 = pnand %p3052_p2, %p3046_p13 }
  0xe6   : > { %2800 = vmatmul.mubr.msk.bf16.vlgmr.msra.gmra.mrb[24].mxu0 %vm252_vm2, %v2794_v9  ;;  %v1060_v45 = vsel %vm256_vm1, %v1031_v43, 0 }
  0xe7   : > { %2898 = vmatpush3.bf16.msra.mxu0 %v785_v19  ;;  %2899 = vmatprep.mubr.msk.bf16.mxu0 %vm3121_vm3, %v3120_v37 }
  0xe8   : > { %2807 = vmatprep.subr.msk.bf16.mxu0 %vm256_vm1, %v1026_v23  ;;  %v1278_v25 = vpop.permute.xlu0 %1277  ;;  %v1280_v26 = vpop.permute.xlu1 %1279 }
  0xe9   : > { %v1298_v48 = vsel %vm1297_vm6, %v1278_v25, %v1280_v26 }
  0xea   : > { %2802 = vmatmul.mubr.msk.bf16.vlgmr.msra.gmra.mrb[24].mxu1 %vm252_vm2, %v2794_v9  ;;  %v1311_v50 = vsel %vm256_vm1, %v1298_v48, 0  ;;  %v2834_v48 = vld [vmem:[%s3741_s1 + $0x18] sm:$0xf] }
  0xeb   : > { %1063 = vmatpush1.bf16.msra.mxu1 %v1036_v24  ;;  %1094 = vmatprep.mubr.bf16.mxu1 %v3112_v0 }
  0xec   : > { %2809 = vmatprep.subr.msk.bf16.mxu1 %vm256_vm1, %v1028_v28  ;;  %v1282_v30 = vpop.permute.xlu0 %1281  ;;  %v1284_v31 = vpop.permute.xlu1 %1283 }
  0xed   : > { %v1299_v44 = vsel %vm1297_vm6, %v1280_v26, %v1282_v30  ;;  %v1300_v53 = vsel %vm1297_vm6, %v1282_v30, %v1284_v31 }
  0xee   : > { %2900 = vmatmul.mubr.msk.bf16.vlgmr.msra.gmra.mrb[28].mxu0 %vm252_vm2, %v2794_v9  ;;  %v1317_v55 = vsel %vm256_vm1, %v1300_v53, 0 }
  0xef   : > { %1104 = vmatpush1.bf16.msra.mxu0 %v1042_v29  ;;  %1135 = vmatprep.mubr.bf16.mxu0 %v3112_v0 }
  0xf0   : > { %2811 = vmatprep.subr.msk.bf16.mxu0 %vm256_vm1, %v1030_v33  ;;  %v1286_v36 = vpop.permute.xlu0 %1285  ;;  %v1288_v38 = vpop.permute.xlu1 %1287 }
  0xf1   : > { %v1301_v49 = vsel %vm1297_vm6, %v1284_v31, %v1286_v36  ;;  %v1302_v58 = vsel %vm1297_vm6, %v1286_v36, %v1288_v38 }
  0xf2   : > { %2806 = vmatmul.mubr.msk.bf16.vlgmr.msra.gmra.mrb[28].mxu1 %vm252_vm2, %v2804_v34  ;;  %v1323_v61 = vsel %vm256_vm1, %v1302_v58, 0 }
  0xf3   : > { %1145 = vmatpush1.bf16.msra.mxu1 %v1048_v35  ;;  %1176 = vmatprep.mubr.bf16.mxu1 %v3112_v0 }
  0xf4   : > { %2903 = vmatprep.subr.bf16.mxu1 %v3120_v37  ;;  %v1290_v41 = vpop.permute.xlu0 %1289  ;;  %v1292_v42 = vpop.permute.xlu1 %1291 }
  0xf5   : > { %v1303_v54 = vsel %vm1297_vm6, %v1288_v38, %v1290_v41  ;;  %v1304_v1 = vsel %vm1297_vm6, %v1290_v41, %v1292_v42 }
  0xf6   : > { %2808 = vmatmul.mubr.msk.bf16.vlgmr.msra.gmra.mrb[32].mxu0 %vm252_vm2, %v2804_v34  ;;  %v1329_v2 = vsel %vm256_vm1, %v1304_v1, 0 }
  0xf7   : > { %1186 = vmatpush1.bf16.msra.mxu0 %v1054_v40  ;;  %1217 = vmatprep.mubr.bf16.mxu0 %v3112_v0 }
  0xf8   : > { %2815 = vmatprep.subr.msk.bf16.mxu0 %vm256_vm1, %v1299_v44  ;;  %v1294_v46 = vpop.permute.xlu0 %1293  ;;  %v1296_v47 = vpop.permute.xlu1 %1295 }
  0xf9   : > { %v1305_v59 = vsel %vm1297_vm6, %v1292_v42, %v1294_v46  ;;  %v1306_v5 = vsel %vm1297_vm6, %v1294_v46, %v1296_v47 }
  0xfa   : > { %2810 = vmatmul.mubr.msk.bf16.vlgmr.msra.gmra.mrb[32].mxu1 %vm252_vm2, %v2804_v34  ;;  %v1335_v7 = vsel %vm256_vm1, %v1306_v5, 0 }
  0xfb   : > { %2904 = vmatpush3.bf16.msra.mxu1 %v1060_v45  ;;  %2905 = vmatprep.mubr.msk.bf16.mxu1 %vm3121_vm3, %v3120_v37 }
  0xfc   : > { %2817 = vmatprep.subr.msk.bf16.mxu1 %vm256_vm1, %v1301_v49  ;;  %v1553_v51 = vpop.permute.xlu0 %1552  ;;  %v1555_v52 = vpop.permute.xlu1 %1554  ;;  %v2650_v49 = vld [vmem:[%s3742_s2] sm:$0xff] }
  0xfd   : > { %v1573_v10 = vsel %vm1572_vm7, %v1553_v51, %v1555_v52  ;;  %2653 = vperm.xlu0 %3001, %v2650_v49  }
  0xfe   : > { %2812 = vmatmul.mubr.msk.bf16.vlgmr.msra.gmra.mrb[36].mxu0 %vm252_vm2, %v2804_v34  ;;  %v1586_v12 = vsel %vm256_vm1, %v1573_v10, 0 }
  0xff   : > { %1338 = vmatpush1.bf16.msra.mxu0 %v1311_v50  ;;  %1369 = vmatprep.mubr.bf16.mxu0 %v3112_v0 }
 0x100   : > { %2819 = vmatprep.subr.msk.bf16.mxu0 %vm256_vm1, %v1303_v54  ;;  %v1557_v56 = vpop.permute.xlu0 %1556  ;;  %v1559_v57 = vpop.permute.xlu1 %1558 }
 0x101   : > { %v1574_v6 = vsel %vm1572_vm7, %v1555_v52, %v1557_v56  ;;  %v1575_v15 = vsel %vm1572_vm7, %v1557_v56, %v1559_v57 }
 0x102   : > { %2906 = vmatmul.mubr.msk.bf16.vlgmr.msra.gmra.mrb[36].mxu1 %vm252_vm2, %v2804_v34  ;;  %v1592_v17 = vsel %vm256_vm1, %v1575_v15, 0 }
 0x103   : > { %1379 = vmatpush1.bf16.msra.mxu1 %v1317_v55  ;;  %1410 = vmatprep.mubr.bf16.mxu1 %v3112_v0 }
 0x104   : > { %2821 = vmatprep.subr.msk.bf16.mxu1 %vm256_vm1, %v1305_v59  ;;  %v1561_v62 = vpop.permute.xlu0 %1560  ;;  %v1563_v63 = vpop.permute.xlu1 %1562 }
 0x105   : > { %v1576_v11 = vsel %vm1572_vm7, %v1559_v57, %v1561_v62  ;;  %v1577_v20 = vsel %vm1572_vm7, %v1561_v62, %v1563_v63 }
 0x106   : > { %2816 = vmatmul.mubr.msk.bf16.vlgmr.msra.gmra.mrb[40].mxu0 %vm252_vm2, %v2814_v60  ;;  %v1598_v23 = vsel %vm256_vm1, %v1577_v20, 0 }
 0x107   : > { %1420 = vmatpush1.bf16.msra.mxu0 %v1323_v61  ;;  %1451 = vmatprep.mubr.bf16.mxu0 %v3112_v0 }
 0x108   : > { %2909 = vmatprep.subr.bf16.mxu0 %v3120_v37  ;;  %v1565_v3 = vpop.permute.xlu0 %1564  ;;  %v1567_v4 = vpop.permute.xlu1 %1566 }
 0x109   : > { %v1578_v16 = vsel %vm1572_vm7, %v1563_v63, %v1565_v3  ;;  %v1579_v26 = vsel %vm1572_vm7, %v1565_v3, %v1567_v4 }
 0x10a   : > { %2818 = vmatmul.mubr.msk.bf16.vlgmr.msra.gmra.mrb[40].mxu1 %vm252_vm2, %v2814_v60  ;;  %v1604_v27 = vsel %vm256_vm1, %v1579_v26, 0 }
 0x10b   : > { %1461 = vmatpush1.bf16.msra.mxu1 %v1329_v2  ;;  %1492 = vmatprep.mubr.bf16.mxu1 %v3112_v0 }
 0x10c   : > { %2825 = vmatprep.subr.msk.bf16.mxu1 %vm256_vm1, %v1574_v6  ;;  %v1569_v8 = vpop.permute.xlu0 %1568  ;;  %v1571_v9 = vpop.permute.xlu1 %1570 }
 0x10d   : > { %v1580_v21 = vsel %vm1572_vm7, %v1567_v4, %v1569_v8  ;;  %v1581_v30 = vsel %vm1572_vm7, %v1569_v8, %v1571_v9  ;;  %v2844_v9 = vld [vmem:[%s3741_s1 + $0x1c] sm:$0xf] }
 0x10e   : > { %2820 = vmatmul.mubr.msk.bf16.vlgmr.msra.gmra.mrb[44].mxu0 %vm252_vm2, %v2814_v60  ;;  %v1610_v32 = vsel %vm256_vm1, %v1581_v30, 0 }
 0x10f   : > { %2910 = vmatpush3.bf16.msra.mxu0 %v1335_v7  ;;  %2911 = vmatprep.mubr.msk.bf16.mxu0 %vm3121_vm3, %v3120_v37 }
 0x110   : > { %2827 = vmatprep.subr.msk.bf16.mxu0 %vm256_vm1, %v1576_v11  ;;  %v1828_v13 = vpop.permute.xlu0 %1827  ;;  %v1830_v14 = vpop.permute.xlu1 %1829 }
 0x111   : > { %v1848_v35 = vsel %vm1847_vm8, %v1828_v13, %v1830_v14 }
 0x112   : > { %2822 = vmatmul.mubr.msk.bf16.vlgmr.msra.gmra.mrb[44].mxu1 %vm252_vm2, %v2814_v60  ;;  %v1861_v38 = vsel %vm256_vm1, %v1848_v35, 0 }
 0x113   : > { %1613 = vmatpush1.bf16.msra.mxu1 %v1586_v12  ;;  %1644 = vmatprep.mubr.bf16.mxu1 %v3112_v0 }
 0x114   : > { %2829 = vmatprep.subr.msk.bf16.mxu1 %vm256_vm1, %v1578_v16  ;;  %v1832_v18 = vpop.permute.xlu0 %1831  ;;  %v1834_v19 = vpop.permute.xlu1 %1833 }
 0x115   : > { %v1849_v31 = vsel %vm1847_vm8, %v1830_v14, %v1832_v18  ;;  %v1850_v40 = vsel %vm1847_vm8, %v1832_v18, %v1834_v19 }
 0x116   : > { %2912 = vmatmul.mubr.msk.bf16.vlgmr.msra.gmra.mrb[48].mxu0 %vm252_vm2, %v2814_v60  ;;  %v1867_v43 = vsel %vm256_vm1, %v1850_v40, 0 }
 0x117   : > { %1654 = vmatpush1.bf16.msra.mxu0 %v1592_v17  ;;  %1685 = vmatprep.mubr.bf16.mxu0 %v3112_v0 }
 0x118   : > { %2831 = vmatprep.subr.msk.bf16.mxu0 %vm256_vm1, %v1580_v21  ;;  %v1836_v24 = vpop.permute.xlu0 %1835  ;;  %v1838_v25 = vpop.permute.xlu1 %1837 }
 0x119   : > { %v1851_v36 = vsel %vm1847_vm8, %v1834_v19, %v1836_v24  ;;  %v1852_v44 = vsel %vm1847_vm8, %v1836_v24, %v1838_v25 }
 0x11a   : > { %2826 = vmatmul.mubr.msk.bf16.vlgmr.msra.gmra.mrb[48].mxu1 %vm252_vm2, %v2824_v22  ;;  %v1873_v50 = vsel %vm256_vm1, %v1852_v44, 0 }
 0x11b   : > { %1695 = vmatpush1.bf16.msra.mxu1 %v1598_v23  ;;  %1726 = vmatprep.mubr.bf16.mxu1 %v3112_v0 }
 0x11c   : > { %2915 = vmatprep.subr.bf16.mxu1 %v3120_v37  ;;  %v1840_v28 = vpop.permute.xlu0 %1839  ;;  %v1842_v29 = vpop.permute.xlu1 %1841 }
 0x11d   : > { %v1853_v41 = vsel %vm1847_vm8, %v1838_v25, %v1840_v28  ;;  %v1854_v51 = vsel %vm1847_vm8, %v1840_v28, %v1842_v29 }
 0x11e   : > { %2828 = vmatmul.mubr.msk.bf16.vlgmr.msra.gmra.mrb[52].mxu0 %vm252_vm2, %v2824_v22  ;;  %v1879_v54 = vsel %vm256_vm1, %v1854_v51, 0 }
 0x11f   : > { %1736 = vmatpush1.bf16.msra.mxu0 %v1604_v27  ;;  %1767 = vmatprep.mubr.bf16.mxu0 %v3112_v0 }
 0x120   : > { %2835 = vmatprep.subr.msk.bf16.mxu0 %vm256_vm1, %v1849_v31  ;;  %v1844_v33 = vpop.permute.xlu0 %1843  ;;  %v1846_v34 = vpop.permute.xlu1 %1845  ;;  %v2854_v31 = vld [vmem:[%s3741_s1 + $0x20] sm:$0xf] }
 0x121   : > { %v1855_v45 = vsel %vm1847_vm8, %v1842_v29, %v1844_v33  ;;  %v1856_v55 = vsel %vm1847_vm8, %v1844_v33, %v1846_v34 }
 0x122   : > { %2830 = vmatmul.mubr.msk.bf16.vlgmr.msra.gmra.mrb[52].mxu1 %vm252_vm2, %v2824_v22  ;;  %v1885_v58 = vsel %vm256_vm1, %v1856_v55, 0 }
 0x123   : > { %2916 = vmatpush3.bf16.msra.mxu1 %v1610_v32  ;;  %2917 = vmatprep.mubr.msk.bf16.mxu1 %vm3121_vm3, %v3120_v37 }
 0x124   : > { %2837 = vmatprep.subr.msk.bf16.mxu1 %vm256_vm1, %v1851_v36  ;;  %v2103_v39 = vpop.permute.xlu0 %2102 }
 0x125   : > { %v2105_v42 = vpop.permute.xlu1 %2104 }
 0x126   : > { %2832 = vmatmul.mubr.msk.bf16.vlgmr.msra.gmra.mrb[56].mxu0 %vm252_vm2, %v2824_v22  ;;  %v2123_v60 = vsel %vm2122_vm9, %v2103_v39, %v2105_v42 }
 0x127   : > { %1888 = vmatpush1.bf16.msra.mxu0 %v1861_v38  ;;  %1919 = vmatprep.mubr.bf16.mxu0 %v3112_v0  ;;  %v2136_v63 = vsel %vm256_vm1, %v2123_v60, 0 }
 0x128   : > { %2839 = vmatprep.subr.msk.bf16.mxu0 %vm256_vm1, %v1853_v41 }
 0x12a   : > { %2918 = vmatmul.mubr.msk.bf16.vlgmr.msra.gmra.mrb[56].mxu1 %vm252_vm2, %v2824_v22  ;;  %v2107_v46 = vpop.permute.xlu0 %2106  ;;  %v2109_v47 = vpop.permute.xlu1 %2108 }
 0x12b   : > { %1929 = vmatpush1.bf16.msra.mxu1 %v1867_v43  ;;  %1960 = vmatprep.mubr.bf16.mxu1 %v3112_v0  ;;  %v2124_v56 = vsel %vm2122_vm9, %v2105_v42, %v2107_v46  ;;  %v2125_v2 = vsel %vm2122_vm9, %v2107_v46, %v2109_v47 }
 0x12c   : > { %2841 = vmatprep.subr.msk.bf16.mxu1 %vm256_vm1, %v1855_v45  ;;  %v2142_v5 = vsel %vm256_vm1, %v2125_v2, 0 }
 0x12e   : > { %2836 = vmatmul.mubr.msk.bf16.vlgmr.msra.gmra.mrb[60].mxu0 %vm252_vm2, %v2834_v48  ;;  %v2111_v52 = vpop.permute.xlu0 %2110 }
 0x12f   : > { %1970 = vmatpush1.bf16.msra.mxu0 %v1873_v50  ;;  %2001 = vmatprep.mubr.bf16.mxu0 %v3112_v0  ;;  %v2113_v53 = vpop.permute.xlu1 %2112  ;;  %v2126_v61 = vsel %vm2122_vm9, %v2109_v47, %v2111_v52 }
 0x130   : > { %2921 = vmatprep.subr.bf16.mxu0 %v3120_v37  ;;  %v2127_v7 = vsel %vm2122_vm9, %v2111_v52, %v2113_v53 }
 0x131   : > { %v2148_v11 = vsel %vm256_vm1, %v2127_v7, 0 }
 0x132   : > { %2838 = vmatmul.mubr.msk.bf16.vlgmr.msra.gmra.mrb[60].mxu1 %vm252_vm2, %v2834_v48 }
 0x133   : > { %2011 = vmatpush1.bf16.msra.mxu1 %v1879_v54  ;;  %2042 = vmatprep.mubr.bf16.mxu1 %v3112_v0  ;;  %v2115_v57 = vpop.permute.xlu0 %2114 }
 0x134   : > { %2845 = vmatprep.subr.msk.bf16.mxu1 %vm256_vm1, %v2124_v56  ;;  %v2117_v59 = vpop.permute.xlu1 %2116  ;;  %v2128_v3 = vsel %vm2122_vm9, %v2113_v53, %v2115_v57 }
 0x135   : > { %v2129_v12 = vsel %vm2122_vm9, %v2115_v57, %v2117_v59 }
 0x136   : > { %2840 = vmatmul.mubr.msk.bf16.vlgmr.msra.gmra.mrb[64].mxu0 %vm252_vm2, %v2834_v48  ;;  %v2154_v15 = vsel %vm256_vm1, %v2129_v12, 0 }
 0x137   : > { %2922 = vmatpush3.bf16.msra.mxu0 %v1885_v58  ;;  %2923 = vmatprep.mubr.msk.bf16.mxu0 %vm3121_vm3, %v3120_v37  ;;  %v2119_v62 = vpop.permute.xlu0 %2118 }
 0x138   : > { %2847 = vmatprep.subr.msk.bf16.mxu0 %vm256_vm1, %v2126_v61  ;;  %v2121_v1 = vpop.permute.xlu1 %2120  ;;  %v2130_v8 = vsel %vm2122_vm9, %v2117_v59, %v2119_v62 }
 0x139   : > { %v2131_v16 = vsel %vm2122_vm9, %v2119_v62, %v2121_v1 }
 0x13a   : > { %2842 = vmatmul.mubr.msk.bf16.vlgmr.msra.gmra.mrb[64].mxu1 %vm252_vm2, %v2834_v48  ;;  %v2160_v18 = vsel %vm256_vm1, %v2131_v16, 0 }
 0x13b   : > { %2163 = vmatpush1.bf16.msra.mxu1 %v2136_v63  ;;  %2194 = vmatprep.mubr.bf16.mxu1 %v3112_v0  ;;  %v2378_v4 = vpop.permute.xlu0 %2377 }
 0x13c   : > { %2849 = vmatprep.subr.msk.bf16.mxu1 %vm256_vm1, %v2128_v3  ;;  %v2380_v6 = vpop.permute.xlu1 %2379 }
 0x13d   : > { %v2398_v21 = vsel %vm2397_vm10, %v2378_v4, %v2380_v6 }
 0x13e   : > { %2924 = vmatmul.mubr.msk.bf16.vlgmr.msra.gmra.mrb[68].mxu0 %vm252_vm2, %v2834_v48  ;;  %v2411_v23 = vsel %vm256_vm1, %v2398_v21, 0 }
 0x13f   : > { %2204 = vmatpush1.bf16.msra.mxu0 %v2142_v5  ;;  %2235 = vmatprep.mubr.bf16.mxu0 %v3112_v0  ;;  %v2382_v10 = vpop.permute.xlu0 %2381 }
 0x140   : > { %2851 = vmatprep.subr.msk.bf16.mxu0 %vm256_vm1, %v2130_v8  ;;  %v2384_v13 = vpop.permute.xlu1 %2383  ;;  %v2399_v17 = vsel %vm2397_vm10, %v2380_v6, %v2382_v10 }
 0x141   : > { %v2400_v24 = vsel %vm2397_vm10, %v2382_v10, %v2384_v13 }
 0x142   : > { %2846 = vmatmul.mubr.msk.bf16.vlgmr.msra.gmra.mrb[68].mxu1 %vm252_vm2, %v2844_v9  ;;  %v2417_v28 = vsel %vm256_vm1, %v2400_v24, 0 }
 0x143   : > { %2245 = vmatpush1.bf16.msra.mxu1 %v2148_v11  ;;  %2276 = vmatprep.mubr.bf16.mxu1 %v3112_v0  ;;  %v2386_v14 = vpop.permute.xlu0 %2385 }
 0x144   : > { %2927 = vmatprep.subr.bf16.mxu1 %v3120_v37  ;;  %v2388_v19 = vpop.permute.xlu1 %2387  ;;  %v2401_v22 = vsel %vm2397_vm10, %v2384_v13, %v2386_v14 }
 0x145   : > { %v2402_v29 = vsel %vm2397_vm10, %v2386_v14, %v2388_v19 }
 0x146   : > { %2848 = vmatmul.mubr.msk.bf16.vlgmr.msra.gmra.mrb[72].mxu0 %vm252_vm2, %v2844_v9  ;;  %v2423_v32 = vsel %vm256_vm1, %v2402_v29, 0 }
 0x147   : > { %2286 = vmatpush1.bf16.msra.mxu0 %v2154_v15  ;;  %2317 = vmatprep.mubr.bf16.mxu0 %v3112_v0  ;;  %v2390_v20 = vpop.permute.xlu0 %2389 }
 0x148   : > { %2855 = vmatprep.subr.msk.bf16.mxu0 %vm256_vm1, %v2399_v17  ;;  %v2403_v25 = vsel %vm2397_vm10, %v2388_v19, %v2390_v20  ;;  %v2392_v26 = vpop.permute.xlu1 %2391 }
 0x149   : > { %v2404_v33 = vsel %vm2397_vm10, %v2390_v20, %v2392_v26 }
 0x14a   : > { %2850 = vmatmul.mubr.msk.bf16.vlgmr.msra.gmra.mrb[72].mxu1 %vm252_vm2, %v2844_v9  ;;  %v2429_v35 = vsel %vm256_vm1, %v2404_v33, 0 }
 0x14b   : > { %2928 = vmatpush3.bf16.msra.mxu1 %v2160_v18  ;;  %2929 = vmatprep.mubr.msk.bf16.mxu1 %vm3121_vm3, %v3120_v37  ;;  %v2394_v27 = vpop.permute.xlu0 %2393 }
 0x14c   : > { %2857 = vmatprep.subr.msk.bf16.mxu1 %vm256_vm1, %v2401_v22  ;;  %v2405_v30 = vsel %vm2397_vm10, %v2392_v26, %v2394_v27  ;;  %v2396_v34 = vpop.permute.xlu1 %2395 }
 0x14d   : > { %v2406_v36 = vsel %vm2397_vm10, %v2394_v27, %v2396_v34 }
 0x14e   : > { %2852 = vmatmul.mubr.msk.bf16.vlgmr.msra.gmra.mrb[76].mxu0 %vm252_vm2, %v2844_v9  ;;  %v2435_v38 = vsel %vm256_vm1, %v2406_v36, 0 }
 0x14f   : > { %2438 = vmatpush1.bf16.msra.mxu0 %v2411_v23  ;;  %2469 = vmatprep.mubr.bf16.mxu0 %v3112_v0 }
 0x150   : > { %2859 = vmatprep.subr.msk.bf16.mxu0 %vm256_vm1, %v2403_v25 }
 0x152   : > { %2930 = vmatmul.mubr.msk.bf16.vlgmr.msra.gmra.mrb[76].mxu1 %vm252_vm2, %v2844_v9 }
 0x153   : > { %2479 = vmatpush1.bf16.msra.mxu1 %v2417_v28  ;;  %2510 = vmatprep.mubr.bf16.mxu1 %v3112_v0 }
 0x154   : > { %2861 = vmatprep.subr.msk.bf16.mxu1 %vm256_vm1, %v2405_v30 }
 0x156   : > { %2856 = vmatmul.mubr.msk.bf16.vlgmr.msra.gmra.mrb[80].mxu0 %vm252_vm2, %v2854_v31 }
 0x157   : > { %2520 = vmatpush1.bf16.msra.mxu0 %v2423_v32  ;;  %2551 = vmatprep.mubr.bf16.mxu0 %v3112_v0 }
 0x158   : > { %2933 = vmatprep.subr.bf16.mxu0 %v3120_v37 }
 0x15a   : > { %2858 = vmatmul.mubr.msk.bf16.vlgmr.msra.gmra.mrb[80].mxu1 %vm252_vm2, %v2854_v31 }
 0x15b   : > { %2561 = vmatpush1.bf16.msra.mxu1 %v2429_v35  ;;  %2592 = vmatprep.mubr.bf16.mxu1 %v3112_v0 }
 0x15e   : > { %2860 = vmatmul.mubr.msk.bf16.vlgmr.msra.gmra.mrb[84].mxu0 %vm252_vm2, %v2854_v31 }
 0x15f   : > { %2934 = vmatpush3.bf16.msra.mxu0 %v2435_v38  ;;  %2935 = vmatprep.mubr.msk.bf16.mxu0 %vm3121_vm3, %v3120_v37 }
 0x162   : > { %2862 = vmatmul.mubr.msk.bf16.vlgmr.msra.gmra.mrb[84].mxu1 %vm252_vm2, %v2854_v31 }
 0x166   : > { %2936 = vmatmul.mubr.msk.bf16.vlgmr.msra.gmra.mrb[88].mxu0 %vm252_vm2, %v2854_v31 }
 0x189   : > { %v318_v39 = vpop.f32.mrb[0].mxu0 }
 0x18a   : > { %v320_v40 = vpop.f32.mrb[1].mxu0 }
 0x18b   : > { %v322_v41 = vpop.f32.mrb[2].mxu0 }
 0x18c   : > { %v323_v42 = vpop.f32.mrb[3].mxu0 }
 0x18d   : > { %v359_v43 = vpop.f32.mrb[0].mxu1 }
 0x18e   : > { %v361_v44 = vpop.f32.mrb[1].mxu1 }
 0x18f   : > { %v363_v45 = vpop.f32.mrb[2].mxu1 }
 0x190   : > { %v364_v0 = vpop.f32.mrb[3].mxu1 }
 0x191   : > { %v400_v46 = vpop.f32.mrb[4].mxu0 }
 0x192   : > { %v402_v47 = vpop.f32.mrb[5].mxu0 }
 0x193   : > { %v404_v48 = vpop.f32.mrb[6].mxu0 }
 0x194   : > { %v405_v49 = vpop.f32.mrb[7].mxu0 }
 0x195   : > { %v441_v50 = vpop.f32.mrb[4].mxu1 }
 0x196   : > { %v443_v51 = vpop.f32.mrb[5].mxu1 }
 0x197   : > { %v445_v52 = vpop.f32.mrb[6].mxu1 }
 0x198   : > { %v446_v37 = vpop.f32.mrb[7].mxu1 }
 0x199   : > { %v482_v53 = vpop.f32.mrb[8].mxu0 }
 0x19a   : > { %v2889_v54 = vpop.f32.mrb[9].mxu0 }
 0x19b   : > { %v485_v55 = vpop.f32.mrb[10].mxu0 }
 0x19c   : > { %v2890_v56 = vpop.f32.mrb[11].mxu0 }
 0x19d   : > { %v555_v57 = vpop.f32.mrb[8].mxu1 }
 0x19e   : > { %v556_v58 = vadd.f32 %v555_v57, %v318_v39  ;;  %v557_v59 = vpop.f32.mrb[9].mxu1 }
 0x19f   : > { %v558_v60 = vadd.f32 %v557_v59, %v320_v40  ;;  %v559_v61 = vpop.f32.mrb[10].mxu1 }
 0x1a0   : > { %v560_v62 = vpop.f32.mrb[11].mxu1 }
 0x1a1   : > { %v596_v63 = vpop.f32.mrb[12].mxu0 }
 0x1a2   : > { %v597_v1 = vadd.f32 %v596_v63, %v359_v43  ;;  %v598_v2 = vpop.f32.mrb[13].mxu0 }
 0x1a3   : > { %v599_v3 = vadd.f32 %v598_v2, %v361_v44  ;;  %v600_v4 = vpop.f32.mrb[14].mxu0 }
 0x1a4   : > { %v601_v5 = vpop.f32.mrb[15].mxu0 }
 0x1a5   : > { %v637_v6 = vpop.f32.mrb[12].mxu1 }
 0x1a6   : > { %v638_v7 = vadd.f32 %v637_v6, %v400_v46  ;;  %v639_v8 = vpop.f32.mrb[13].mxu1 }
 0x1a7   : > { %v640_v9 = vadd.f32 %v639_v8, %v402_v47  ;;  %v641_v10 = vpop.f32.mrb[14].mxu1 }
 0x1a8   : > { %v642_v11 = vpop.f32.mrb[15].mxu1 }
 0x1a9   : > { %v678_v12 = vpop.f32.mrb[16].mxu0 }
 0x1aa   : > { %v679_v13 = vadd.f32 %v678_v12, %v441_v50  ;;  %v680_v14 = vpop.f32.mrb[17].mxu0 }
 0x1ab   : > { %v681_v15 = vadd.f32 %v680_v14, %v443_v51  ;;  %v682_v16 = vpop.f32.mrb[18].mxu0 }
 0x1ac   : > { %v683_v17 = vpop.f32.mrb[19].mxu0 }
 0x1ad   : > { %v719_v18 = vpop.f32.mrb[16].mxu1 }
 0x1ae   : > { %v720_v19 = vadd.f32 %v719_v18, %v482_v53  ;;  %v2895_v20 = vpop.f32.mrb[17].mxu1 }
 0x1af   : > { %v722_v21 = vpop.f32.mrb[18].mxu1 }
 0x1b0   : > { %v2896_v22 = vpop.f32.mrb[19].mxu1 }
 0x1b1   : > { %v821_v23 = vpop.f32.mrb[20].mxu0 }
 0x1b2   : > { %v991_v24 = vadd.f32 %v821_v23, %v556_v58  ;;  %v823_v25 = vpop.f32.mrb[21].mxu0 }
 0x1b3   : > { %v992_v26 = vadd.f32 %v823_v25, %v558_v60  ;;  %v825_v27 = vpop.f32.mrb[22].mxu0 }
 0x1b4   : > { %v826_v28 = vpop.f32.mrb[23].mxu0 }
 0x1b5   : > { %v862_v29 = vpop.f32.mrb[20].mxu1 }
 0x1b6   : > { %v993_v30 = vadd.f32 %v862_v29, %v597_v1  ;;  %v864_v31 = vpop.f32.mrb[21].mxu1 }
 0x1b7   : > { %v994_v32 = vadd.f32 %v864_v31, %v599_v3  ;;  %v866_v33 = vpop.f32.mrb[22].mxu1 }
 0x1b8   : > { %v867_v34 = vpop.f32.mrb[23].mxu1 }
 0x1b9   : > { %v903_v35 = vpop.f32.mrb[24].mxu0 }
 0x1ba   : > { %v995_v36 = vadd.f32 %v903_v35, %v638_v7  ;;  %v905_v38 = vpop.f32.mrb[25].mxu0 }
 0x1bb   : > { %v996_v39 = vadd.f32 %v905_v38, %v640_v9  ;;  %v907_v40 = vpop.f32.mrb[26].mxu0 }
 0x1bc   : > { %v908_v41 = vpop.f32.mrb[27].mxu0 }
 0x1bd   : > { %v944_v42 = vpop.f32.mrb[24].mxu1 }
 0x1be   : > { %v997_v43 = vadd.f32 %v944_v42, %v679_v13  ;;  %v946_v44 = vpop.f32.mrb[25].mxu1 }
 0x1bf   : > { %v998_v45 = vadd.f32 %v946_v44, %v681_v15  ;;  %v948_v0 = vpop.f32.mrb[26].mxu1 }
 0x1c0   : > { %v949_v46 = vpop.f32.mrb[27].mxu1 }
 0x1c1   : > { %v985_v47 = vpop.f32.mrb[28].mxu0 }
 0x1c2   : > { %v999_v48 = vadd.f32 %v985_v47, %v720_v19  ;;  %v2901_v49 = vpop.f32.mrb[29].mxu0 }
 0x1c3   : > { %v988_v50 = vpop.f32.mrb[30].mxu0 }
 0x1c4   : > { %v2902_v51 = vpop.f32.mrb[31].mxu0 }
 0x1c5   : > { %v1096_v52 = vpop.f32.mrb[28].mxu1 }
 0x1c6   : > { %v1266_v37 = vadd.f32 %v1096_v52, %v991_v24  ;;  %v1098_v53 = vpop.f32.mrb[29].mxu1 }
 0x1c7   : > { %v1267_v54 = vadd.f32 %v1098_v53, %v992_v26  ;;  %v1100_v55 = vpop.f32.mrb[30].mxu1 }
 0x1c8   : > { %v1101_v56 = vpop.f32.mrb[31].mxu1 }
 0x1c9   : > { %v1137_v57 = vpop.f32.mrb[32].mxu0 }
 0x1ca   : > { %v1268_v58 = vadd.f32 %v1137_v57, %v993_v30  ;;  %v1139_v59 = vpop.f32.mrb[33].mxu0 }
 0x1cb   : > { %v1269_v60 = vadd.f32 %v1139_v59, %v994_v32  ;;  %v1141_v61 = vpop.f32.mrb[34].mxu0 }
 0x1cc   : > { %v1142_v62 = vpop.f32.mrb[35].mxu0 }
 0x1cd   : > { %v1178_v63 = vpop.f32.mrb[32].mxu1 }
 0x1ce   : > { %v1270_v1 = vadd.f32 %v1178_v63, %v995_v36  ;;  %v1180_v2 = vpop.f32.mrb[33].mxu1 }
 0x1cf   : > { %v1271_v3 = vadd.f32 %v1180_v2, %v996_v39  ;;  %v1182_v4 = vpop.f32.mrb[34].mxu1 }
 0x1d0   : > { %v1183_v5 = vpop.f32.mrb[35].mxu1 }
 0x1d1   : > { %v1219_v6 = vpop.f32.mrb[36].mxu0 }
 0x1d2   : > { %v1272_v7 = vadd.f32 %v1219_v6, %v997_v43  ;;  %v1221_v8 = vpop.f32.mrb[37].mxu0 }
 0x1d3   : > { %v1273_v9 = vadd.f32 %v1221_v8, %v998_v45  ;;  %v1223_v10 = vpop.f32.mrb[38].mxu0 }
 0x1d4   : > { %v1224_v11 = vpop.f32.mrb[39].mxu0 }
 0x1d5   : > { %v1260_v12 = vpop.f32.mrb[36].mxu1 }
 0x1d6   : > { %v1274_v13 = vadd.f32 %v1260_v12, %v999_v48  ;;  %v2907_v14 = vpop.f32.mrb[37].mxu1 }
 0x1d7   : > { %v1263_v15 = vpop.f32.mrb[38].mxu1 }
 0x1d8   : > { %v2908_v16 = vpop.f32.mrb[39].mxu1 }
 0x1d9   : > { %v1371_v17 = vpop.f32.mrb[40].mxu0 }
 0x1da   : > { %v1541_v18 = vadd.f32 %v1371_v17, %v1266_v37  ;;  %v1373_v19 = vpop.f32.mrb[41].mxu0 }
 0x1db   : > { %v1542_v20 = vadd.f32 %v1373_v19, %v1267_v54  ;;  %v1375_v21 = vpop.f32.mrb[42].mxu0 }
 0x1dc   : > { %v1376_v22 = vpop.f32.mrb[43].mxu0 }
 0x1dd   : > { %v1412_v23 = vpop.f32.mrb[40].mxu1 }
 0x1de   : > { %v1543_v24 = vadd.f32 %v1412_v23, %v1268_v58  ;;  %v1414_v25 = vpop.f32.mrb[41].mxu1 }
 0x1df   : > { %v1544_v26 = vadd.f32 %v1414_v25, %v1269_v60  ;;  %v1416_v27 = vpop.f32.mrb[42].mxu1 }
 0x1e0   : > { %v1417_v28 = vpop.f32.mrb[43].mxu1 }
 0x1e1   : > { %v1453_v29 = vpop.f32.mrb[44].mxu0 }
 0x1e2   : > { %v1545_v30 = vadd.f32 %v1453_v29, %v1270_v1  ;;  %v1455_v31 = vpop.f32.mrb[45].mxu0 }
 0x1e3   : > { %v1546_v32 = vadd.f32 %v1455_v31, %v1271_v3  ;;  %v1457_v33 = vpop.f32.mrb[46].mxu0 }
 0x1e4   : > { %v1458_v34 = vpop.f32.mrb[47].mxu0 }
 0x1e5   : > { %v1494_v35 = vpop.f32.mrb[44].mxu1 }
 0x1e6   : > { %v1547_v36 = vadd.f32 %v1494_v35, %v1272_v7  ;;  %v1496_v38 = vpop.f32.mrb[45].mxu1 }
 0x1e7   : > { %v1548_v39 = vadd.f32 %v1496_v38, %v1273_v9  ;;  %v1498_v40 = vpop.f32.mrb[46].mxu1 }
 0x1e8   : > { %v1499_v41 = vpop.f32.mrb[47].mxu1 }
 0x1e9   : > { %v1535_v42 = vpop.f32.mrb[48].mxu0 }
 0x1ea   : > { %v1549_v43 = vadd.f32 %v1535_v42, %v1274_v13  ;;  %v2913_v44 = vpop.f32.mrb[49].mxu0 }
 0x1eb   : > { %v1538_v45 = vpop.f32.mrb[50].mxu0 }
 0x1ec   : > { %v2914_v0 = vpop.f32.mrb[51].mxu0 }
 0x1ed   : > { %v1646_v46 = vpop.f32.mrb[48].mxu1 }
 0x1ee   : > { %v1816_v47 = vadd.f32 %v1646_v46, %v1541_v18  ;;  %v1648_v48 = vpop.f32.mrb[49].mxu1 }
 0x1ef   : > { %v1817_v49 = vadd.f32 %v1648_v48, %v1542_v20  ;;  %v1650_v50 = vpop.f32.mrb[50].mxu1 }
 0x1f0   : > { %v1651_v51 = vpop.f32.mrb[51].mxu1 }
 0x1f1   : > { %v1687_v52 = vpop.f32.mrb[52].mxu0 }
 0x1f2   : > { %v1818_v37 = vadd.f32 %v1687_v52, %v1543_v24  ;;  %v1689_v53 = vpop.f32.mrb[53].mxu0 }
 0x1f3   : > { %v1819_v54 = vadd.f32 %v1689_v53, %v1544_v26  ;;  %v1691_v55 = vpop.f32.mrb[54].mxu0 }
 0x1f4   : > { %v1692_v56 = vpop.f32.mrb[55].mxu0 }
 0x1f5   : > { %v1728_v57 = vpop.f32.mrb[52].mxu1 }
 0x1f6   : > { %v1820_v58 = vadd.f32 %v1728_v57, %v1545_v30  ;;  %v1730_v59 = vpop.f32.mrb[53].mxu1 }
 0x1f7   : > { %v1821_v60 = vadd.f32 %v1730_v59, %v1546_v32  ;;  %v1732_v61 = vpop.f32.mrb[54].mxu1 }
 0x1f8   : > { %v1733_v62 = vpop.f32.mrb[55].mxu1 }
 0x1f9   : > { %v1769_v63 = vpop.f32.mrb[56].mxu0 }
 0x1fa   : > { %v1822_v1 = vadd.f32 %v1769_v63, %v1547_v36  ;;  %v1771_v2 = vpop.f32.mrb[57].mxu0 }
 0x1fb   : > { %v1823_v3 = vadd.f32 %v1771_v2, %v1548_v39  ;;  %v1773_v4 = vpop.f32.mrb[58].mxu0 }
 0x1fc   : > { %v1774_v5 = vpop.f32.mrb[59].mxu0 }
 0x1fd   : > { %v1810_v6 = vpop.f32.mrb[56].mxu1 }
 0x1fe   : > { %v1824_v7 = vadd.f32 %v1810_v6, %v1549_v43  ;;  %v2919_v8 = vpop.f32.mrb[57].mxu1  ;;  %v2654_v6 = vpop.permute.xlu0 %2653 }
 0x1ff   : > { %v1813_v9 = vpop.f32.mrb[58].mxu1 }
 0x200   : > { %v2920_v10 = vpop.f32.mrb[59].mxu1 }
 0x201   : > { %v1921_v11 = vpop.f32.mrb[60].mxu0 }
 0x202   : > { %v2091_v12 = vadd.f32 %v1921_v11, %v1816_v47  ;;  %v1923_v13 = vpop.f32.mrb[61].mxu0 }
 0x203   : > { %v2092_v14 = vadd.f32 %v1923_v13, %v1817_v49  ;;  %v1925_v15 = vpop.f32.mrb[62].mxu0 }
 0x204   : > { %v1926_v16 = vpop.f32.mrb[63].mxu0 }
 0x205   : > { %v1962_v17 = vpop.f32.mrb[60].mxu1 }
 0x206   : > { %v2093_v18 = vadd.f32 %v1962_v17, %v1818_v37  ;;  %v1964_v19 = vpop.f32.mrb[61].mxu1 }
 0x207   : > { %v2094_v20 = vadd.f32 %v1964_v19, %v1819_v54  ;;  %v1966_v21 = vpop.f32.mrb[62].mxu1 }
 0x208   : > { %v1967_v22 = vpop.f32.mrb[63].mxu1 }
 0x209   : > { %v2003_v23 = vpop.f32.mrb[64].mxu0 }
 0x20a   : > { %v2095_v24 = vadd.f32 %v2003_v23, %v1820_v58  ;;  %v2005_v25 = vpop.f32.mrb[65].mxu0 }
 0x20b   : > { %v2096_v26 = vadd.f32 %v2005_v25, %v1821_v60  ;;  %v2007_v27 = vpop.f32.mrb[66].mxu0 }
 0x20c   : > { %v2008_v28 = vpop.f32.mrb[67].mxu0 }
 0x20d   : > { %v2044_v29 = vpop.f32.mrb[64].mxu1 }
 0x20e   : > { %v2097_v30 = vadd.f32 %v2044_v29, %v1822_v1  ;;  %v2046_v31 = vpop.f32.mrb[65].mxu1 }
 0x20f   : > { %v2098_v32 = vadd.f32 %v2046_v31, %v1823_v3  ;;  %v2048_v33 = vpop.f32.mrb[66].mxu1 }
 0x210   : > { %v2049_v34 = vpop.f32.mrb[67].mxu1 }
 0x211   : > { %v2085_v35 = vpop.f32.mrb[68].mxu0 }
 0x212   : > { %v2099_v36 = vadd.f32 %v2085_v35, %v1824_v7  ;;  %v2925_v38 = vpop.f32.mrb[69].mxu0 }
 0x213   : > { %v2088_v39 = vpop.f32.mrb[70].mxu0 }
 0x214   : > { %v2926_v40 = vpop.f32.mrb[71].mxu0 }
 0x215   : > { %v2196_v41 = vpop.f32.mrb[68].mxu1 }
 0x216   : > { %v2366_v42 = vadd.f32 %v2196_v41, %v2091_v12  ;;  %v2198_v43 = vpop.f32.mrb[69].mxu1 }
 0x217   : > { %v2367_v44 = vadd.f32 %v2198_v43, %v2092_v14  ;;  %v2200_v45 = vpop.f32.mrb[70].mxu1 }
 0x218   : > { %v2201_v0 = vpop.f32.mrb[71].mxu1 }
 0x219   : > { %v2237_v46 = vpop.f32.mrb[72].mxu0 }
 0x21a   : > { %v2368_v47 = vadd.f32 %v2237_v46, %v2093_v18  ;;  %v2239_v48 = vpop.f32.mrb[73].mxu0 }
 0x21b   : > { %v2369_v49 = vadd.f32 %v2239_v48, %v2094_v20  ;;  %v2241_v50 = vpop.f32.mrb[74].mxu0 }
 0x21c   : > { %v2242_v51 = vpop.f32.mrb[75].mxu0 }
 0x21d   : > { %v2278_v52 = vpop.f32.mrb[72].mxu1 }
 0x21e   : > { %v2370_v37 = vadd.f32 %v2278_v52, %v2095_v24  ;;  %v2280_v53 = vpop.f32.mrb[73].mxu1 }
 0x21f   : > { %v2371_v54 = vadd.f32 %v2280_v53, %v2096_v26  ;;  %v2282_v55 = vpop.f32.mrb[74].mxu1 }
 0x220   : > { %v2283_v56 = vpop.f32.mrb[75].mxu1 }
 0x221   : > { %v2319_v57 = vpop.f32.mrb[76].mxu0 }
 0x222   : > { %v2372_v58 = vadd.f32 %v2319_v57, %v2097_v30  ;;  %v2321_v59 = vpop.f32.mrb[77].mxu0 }
 0x223   : > { %v2373_v60 = vadd.f32 %v2321_v59, %v2098_v32  ;;  %v2323_v61 = vpop.f32.mrb[78].mxu0 }
 0x224   : > { %v2324_v62 = vpop.f32.mrb[79].mxu0 }
 0x225   : > { %v2360_v63 = vpop.f32.mrb[76].mxu1 }
 0x226   : > { %v2374_v1 = vadd.f32 %v2360_v63, %v2099_v36  ;;  %v2931_v2 = vpop.f32.mrb[77].mxu1 }
 0x227   : > { %v2363_v3 = vpop.f32.mrb[78].mxu1 }
 0x228   : > { %v2932_v4 = vpop.f32.mrb[79].mxu1 }
 0x229   : > { %v2471_v5 = vpop.f32.mrb[80].mxu0 }
 0x22a   : > { %v2641_v7 = vadd.f32 %v2471_v5, %v2366_v42  ;;  %v2473_v8 = vpop.f32.mrb[81].mxu0 }
 0x22b   : > { %v2642_v9 = vadd.f32 %v2473_v8, %v2367_v44  ;;  %v2475_v10 = vpop.f32.mrb[82].mxu0 }
 0x22c   : > { %v2656_v11 = vadd.f32 %v2654_v6, %v2641_v7  ;;  %v2476_v12 = vpop.f32.mrb[83].mxu0 }
 0x22d   : > { %v2657_v13 = vadd.f32 %v2654_v6, %v2642_v9  ;;  %v2512_v14 = vpop.f32.mrb[80].mxu1 }
 0x22e   : > { %2665 = vst [vmem:[%s3680_s26] sm:$0xff] %v2656_v11  ;;  %v2643_v15 = vadd.f32 %v2512_v14, %v2368_v47  ;;  %v2514_v16 = vpop.f32.mrb[81].mxu1 }
 0x22f   : > { %2666 = vst [vmem:[%s3680_s26 + $0x8] sm:$0xff] %v2657_v13  ;;  %v2644_v17 = vadd.f32 %v2514_v16, %v2369_v49  ;;  %v2516_v18 = vpop.f32.mrb[82].mxu1 }
 0x230   : > { %v2658_v19 = vadd.f32 %v2654_v6, %v2643_v15  ;;  %v2517_v20 = vpop.f32.mrb[83].mxu1 }
 0x231   : > { %v2659_v21 = vadd.f32 %v2654_v6, %v2644_v17  ;;  %v2553_v22 = vpop.f32.mrb[84].mxu0 }
 0x232   : > { %2667 = vst [vmem:[%s3680_s26 + $0x10] sm:$0xff] %v2658_v19  ;;  %v2645_v23 = vadd.f32 %v2553_v22, %v2370_v37  ;;  %v2555_v24 = vpop.f32.mrb[85].mxu0 }
 0x233   : > { %2668 = vst [vmem:[%s3680_s26 + $0x18] sm:$0xff] %v2659_v21  ;;  %v2646_v25 = vadd.f32 %v2555_v24, %v2371_v54  ;;  %v2557_v26 = vpop.f32.mrb[86].mxu0 }
 0x234   : > { %v2660_v27 = vadd.f32 %v2654_v6, %v2645_v23  ;;  %v2558_v28 = vpop.f32.mrb[87].mxu0 }
 0x235   : > { %v2661_v29 = vadd.f32 %v2654_v6, %v2646_v25  ;;  %v2594_v30 = vpop.f32.mrb[84].mxu1 }
 0x236   : > { %2669 = vst [vmem:[%s3680_s26 + $0x20] sm:$0xff] %v2660_v27  ;;  %v2647_v31 = vadd.f32 %v2594_v30, %v2372_v58  ;;  %v2596_v32 = vpop.f32.mrb[85].mxu1 }
 0x237   : > { %2670 = vst [vmem:[%s3680_s26 + $0x28] sm:$0xff] %v2661_v29  ;;  %v2648_v33 = vadd.f32 %v2596_v32, %v2373_v60  ;;  %v2598_v34 = vpop.f32.mrb[86].mxu1 }
 0x238   : > { %v2662_v35 = vadd.f32 %v2654_v6, %v2647_v31  ;;  %v2599_v36 = vpop.f32.mrb[87].mxu1 }
 0x239   : > { %v2663_v38 = vadd.f32 %v2654_v6, %v2648_v33  ;;  %v2635_v39 = vpop.f32.mrb[88].mxu0 }
 0x23a   : > { %2671 = vst [vmem:[%s3680_s26 + $0x30] sm:$0xff] %v2662_v35  ;;  %v2649_v40 = vadd.f32 %v2635_v39, %v2374_v1  ;;  %v2937_v41 = vpop.f32.mrb[89].mxu0 }
 0x23b   : > { %2672 = vst [vmem:[%s3680_s26 + $0x38] sm:$0xff] %v2663_v38  ;;  %v2638_v42 = vpop.f32.mrb[90].mxu0 }
 0x23c   : > { %v2664_v43 = vadd.f32 %v2654_v6, %v2649_v40  ;;  %v2938_v44 = vpop.f32.mrb[91].mxu0 }
 0x23e   : > { %2673 = vst [vmem:[%s3680_s26 + $0x40] sm:$0xff] %v2664_v43 }
 0x23f   : > { %3056 = shalt.err (!%p3053_p4)
}
 0x240   : > { %s3057_s28 = scalar_lea.hbm %s3695_s22, 1152  ;;  %s3061_s11 = scalar_lea.hbm %s3743_s3, 2304 }
 0x241   : > { %p3058_p7 = scmp.ne.s32.totalorder %s3695_s22, %s3057_s28  ;;  %p3062_p0 = scmp.lt.u32.totalorder %s3695_s22, %s3743_s3 }
 0x242   : > { %p3063_p1 = scmp.lt.u32.totalorder %s3061_s11, %s3057_s28  ;;  %p3065_p6 = scmp.lt.u32.totalorder %s3057_s28, %s3695_s22 }
 0x243   : > { %p3059_p8 = pnand %p3058_p7, %p3751_p11 }
 0x244   : > { %p3064_p3 = por %p3063_p1, %p3062_p0 }
 0x245   : > { %p3060_p9 = pneg %p3059_p8 }
 0x246   : > { %p3066_p12 = por %p3065_p6, %p3064_p3 }
 0x248   : > { %p3067_p13 = pnand %p3066_p12, %p3060_p9 }
 0x24a   : > { %3070 = shalt.err (!%p3067_p13)
}
 0x24b   : > { %2946 = dma.vmem_to_hbm [thread:$0]  (%p3751_p11), %s3697_s29, 1152, %s3695_s22, %s2675_s16  }
 0x24c PF: > { %s2701_s20 = sand.u32 1, %s3097_s12   ;;  %p3752_p5 = scmp.ne.s32.totalorder %s3747_s24, 0 }
 0x24d   : > { %p3753_p10 = scmp.ge.s32.totalorder %s3109_s15, 2  ;;  %s2702_s25 = scalar_lea.sflag [#allocation4], %s2701_s20 }
 0x24f   : > { %p2953_p2 = pnand %p3753_p10, %p3752_p5 }
 0x251   : > { %3092 = dma.done.wait (!%p2953_p2), %s2702_s25, 1152  }
 0x252   : > { %3094 = vsyncadd (!%p2953_p2), %s2702_s25, 4294966144  ;;  %p16_p4 = scmp.ge.s32.totalorder %s3169_s18, 4   ;;  %s3754_s12 = smov %s3101_s13 }
 0x253   : > { %s3755_s13 = smov %s3105_s14  ;;  %s3756_s14 = smov %s3181_s21 }
 0x254   : > { %s3757_s15 = smov %s3169_s18  ;;  %18 = sbr.rel (!%p16_p4) target bundleno = 5 (0x5), region = 85 }
 0x25b   :  { %2707 = vsyncpa [#allocation3], 1 }
 0x25c   :  { %2709 = vsyncpa [#allocation3 + $0x1], 1 }
 0x25d   :  { %2710 = vsyncpa [#allocation4], 1 }
 0x25e   :  { %2712 = vsyncpa [#allocation4 + $0x1], 1 }

</bundles_post_ra>
